<compile_context>
chip_gen: v5e
topology: v5e:2x2
jax: 0.10.0
libtpu: 0.0.40
codegen_flags: <defaults>
</compile_context>

<pallas_src>
import functools

import jax
import jax.numpy as jnp
from jax.experimental import pallas as pl
from jax.experimental.pallas import tpu as pltpu


# -----------------------------------------------------------------------------
# Pallas kernel 1: fused convLayer block.
#   p_ref : (4*G, K)  bf16  -- quad-major pooled im2col patches (rows = q,n,p)
#   w_ref : (K, Cout) bf16  -- flattened HWIO conv weights
#   b/sc/sh: (1, Cout) f32  -- conv bias, BN scale, BN shift (eval mode)
#   o_ref : (G, Cout) f32   -- max-pooled block output (rows = n,p)
# -----------------------------------------------------------------------------
def conv_block_kernel(p_ref, w_ref, b_ref, sc_ref, sh_ref, o_ref, *, G):
    # One big MXU matmul over all quads / images / pooled positions.
    z = jnp.dot(p_ref[...], w_ref[...], preferred_element_type=jnp.float32)
    # bias + ReLU + BatchNorm(eval), applied once on the fused result (f32).
    z = jnp.maximum(z + b_ref[...], 0.0)
    z = z * sc_ref[...] + sh_ref[...]
    # MaxPool2x2: max over the 4 contiguous quad row-blocks (aligned slices).
    m01 = jnp.maximum(z[0:G], z[G:2 * G])
    m23 = jnp.maximum(z[2 * G:3 * G], z[3 * G:4 * G])
    o_ref[...] = jnp.maximum(m01, m23)


def conv_block_pallas(patches, w, b, scale, shift):
    # patches: (N, 4, P, K) f32, w: (3, 3, Cin, Cout)
    N, Q, P, K = patches.shape
    Cout = w.shape[-1]
    rows = N * P

    # 2-way "parallel" grid (v7x dual TC) when the per-program row count stays
    # a multiple of 8; otherwise a single program.  Pad rows-per-quad to 8.
    splits = 2 if (N % 2 == 0 and ((N // 2) * P) % 8 == 0) else 1
    Nh = N // splits
    G = Nh * P
    Gp = ((G + 7) // 8) * 8

    # Reorder rows to (split, quad, n_in_split, p) and pad per-quad rows to Gp.
    pq = patches.reshape(splits, Nh, Q, P, K).transpose(0, 2, 1, 3, 4)
    pq = pq.reshape(splits, Q, G, K)
    if Gp != G:
        pq = jnp.pad(pq, ((0, 0), (0, 0), (0, Gp - G), (0, 0)))
    lhs = pq.reshape(splits * Q * Gp, K).astype(jnp.bfloat16)

    wf = w.reshape(K, Cout).astype(jnp.bfloat16)
    b2 = b.reshape(1, Cout).astype(jnp.float32)
    sc2 = scale.reshape(1, Cout).astype(jnp.float32)
    sh2 = shift.reshape(1, Cout).astype(jnp.float32)

    Mrows = Q * Gp
    out = pl.pallas_call(
        functools.partial(conv_block_kernel, G=Gp),
        out_shape=jax.ShapeDtypeStruct((splits * Gp, Cout), jnp.float32),
        grid=(splits,),
        in_specs=[
            pl.BlockSpec((Mrows, K), lambda i: (i, 0)),
            pl.BlockSpec((K, Cout), lambda i: (0, 0)),
            pl.BlockSpec((1, Cout), lambda i: (0, 0)),
            pl.BlockSpec((1, Cout), lambda i: (0, 0)),
            pl.BlockSpec((1, Cout), lambda i: (0, 0)),
        ],
        out_specs=pl.BlockSpec((Gp, Cout), lambda i: (i, 0)),
        compiler_params=pltpu.CompilerParams(
            dimension_semantics=("parallel",)),
    )(lhs, wf, b2, sc2, sh2)

    # Drop row padding; rows end up globally ordered (n, ho, wo).
    out = out.reshape(splits, Gp, Cout)[:, :G].reshape(rows, Cout)
    return out


# JAX glue: build "pooled" im2col patches.  For each of the 4 positions inside
# a 2x2 max-pool window, extract the 3x3 receptive field of every pooled output
# location.  Result: (N, 4, Ho*Wo, 9*Cin).  Pure layout plumbing (XLA).
def extract_pool_patches(x_nhwc):
    N, H, W, Cin = x_nhwc.shape
    Ho, Wo = H // 2, W // 2
    xp = jnp.pad(x_nhwc, ((0, 0), (1, 1), (1, 1), (0, 0)))
    quads = []
    for hb in range(2):
        for wb in range(2):
            taps = []
            for ky in range(3):
                for kx in range(3):
                    sl = xp[:, hb + ky: hb + ky + 2 * Ho: 2,
                            wb + kx: wb + kx + 2 * Wo: 2, :]   # (N, Ho, Wo, Cin)
                    taps.append(sl)
            t = jnp.stack(taps, axis=3)                         # (N, Ho, Wo, 9, Cin)
            quads.append(t.reshape(N, Ho * Wo, 9 * Cin))
    return jnp.stack(quads, axis=1)                             # (N, 4, Ho*Wo, 9*Cin)


def embeddings_extractor(x_nhwc, params):
    # 4 conv blocks: 16x16 -> 8x8 -> 4x4 -> 2x2 -> 1x1 spatial (layer_size=64)
    h = x_nhwc
    N = h.shape[0]
    for (w, b, scale, shift) in params:
        Hn = h.shape[1] // 2
        Wn = h.shape[2] // 2
        patches = extract_pool_patches(h)                       # (N, 4, Hn*Wn, K)
        out = conv_block_pallas(patches, w, b, scale, shift)    # (N*Hn*Wn, Cout)
        h = out.reshape(N, Hn, Wn, out.shape[-1])
    # Final spatial is 1x1, so NHWC flatten == PyTorch NCHW .view(N, -1).
    return h.reshape(N, -1)


# -----------------------------------------------------------------------------
# Pallas kernel 2: DistanceNetwork (support-normalized cosine) + softmax +
# AttentionalClassify bmm with the one-hot support labels.
# -----------------------------------------------------------------------------
def head_kernel(sup_ref, tgt_ref, oh_ref, o_ref):
    # sup: (B, S, D), tgt: (B, 1, D), oh: (B, S, C), o: (B, C)
    sup = sup_ref[...]
    tgt = tgt_ref[...]
    dot = jnp.sum(sup * tgt, axis=-1)                      # (B, S)
    ssq = jnp.sum(sup * sup, axis=-1)                      # (B, S)
    mag = jax.lax.rsqrt(jnp.maximum(ssq, 1e-10))           # clamp(eps, inf).rsqrt()
    sim = dot * mag                                        # similarities (B, S)
    m = jnp.max(sim, axis=1, keepdims=True)
    e = jnp.exp(sim - m)
    inv = pl.reciprocal(jnp.sum(e, axis=1, keepdims=True), approx=True)
    sm = e * inv                                           # softmax over S
    preds = jnp.sum(sm[:, :, None] * oh_ref[...], axis=1)  # bmm -> (B, C)
    o_ref[...] = preds


def attention_head_pallas(support_emb, target_emb, onehot_y):
    B, S, D = support_emb.shape
    C = onehot_y.shape[-1]
    return pl.pallas_call(
        head_kernel,
        out_shape=jax.ShapeDtypeStruct((B, C), jnp.float32),
    )(support_emb, target_emb.reshape(B, 1, D), onehot_y)


# -----------------------------------------------------------------------------
# Full MatchingNetwork.forward (fce=False): returns (accuracy, crossentropy).
# -----------------------------------------------------------------------------
def matching_network_forward(params, support_images, support_y, target_image,
                             target_y, n_way):
    B, S = support_images.shape[0], support_images.shape[1]
    # Stack support images (per sequence index) and the target image, matching
    # torch.stack(encoded_images, dim=0) ordering: (S+1, B, C, H, W).
    all_imgs = jnp.concatenate(
        [jnp.transpose(support_images, (1, 0, 2, 3, 4)), target_image[None]],
        axis=0)
    Sp1 = S + 1
    C, H, W = all_imgs.shape[2], all_imgs.shape[3], all_imgs.shape[4]
    flat = all_imgs.reshape(Sp1 * B, C, H, W)
    flat_nhwc = jnp.transpose(flat, (0, 2, 3, 1))          # NCHW -> NHWC

    emb = embeddings_extractor(flat_nhwc, params)          # ((S+1)*B, D)
    D = emb.shape[-1]
    emb = emb.reshape(Sp1, B, D)
    support_emb = jnp.transpose(emb[:-1], (1, 0, 2))       # (B, S, D)
    target_emb = emb[-1]                                   # (B, D)

    onehot_y = jax.nn.one_hot(support_y, n_way, dtype=jnp.float32)  # (B, S, C)
    preds = attention_head_pallas(support_emb, target_emb, onehot_y)  # (B, n_way)

    # accuracy / cross-entropy (tiny scalar glue, plain JAX)
    indices = jnp.argmax(preds, axis=1)
    accuracy = jnp.mean((indices == target_y).astype(jnp.float32))
    logp = jax.nn.log_softmax(preds, axis=1)
    ce = -jnp.mean(logp[jnp.arange(B), target_y])
    return accuracy, ce


def init_params(key):
    # 4 convLayer blocks: Conv2d(cin, 64, 3, 1, 1) + BN(64); deterministic init.
    params = []
    cin = 1
    keys = jax.random.split(key, 16)
    for i in range(4):
        w = 0.1 * jax.random.normal(keys[4 * i], (3, 3, cin, 64), jnp.float32)
        b = 0.01 * jax.random.normal(keys[4 * i + 1], (64,), jnp.float32)
        gamma = 1.0 + 0.1 * jax.random.normal(keys[4 * i + 2], (64,), jnp.float32)
        beta = 0.1 * jax.random.normal(keys[4 * i + 3], (64,), jnp.float32)
        # Eval-mode BN with running_mean=0, running_var=1, eps=1e-5:
        scale = gamma / jnp.sqrt(1.0 + 1e-5)
        shift = beta
        params.append((w, b, scale, shift))
        cin = 64
    return params


if __name__ == "__main__":
    # Small config: task_num=2, n_way=5, k_spt=1, imgc=1, imgsz=16, fce=False.
    B, n_way, k_spt, imgc, imgsz = 2, 5, 1, 1, 16
    S = n_way * k_spt

    key = jax.random.PRNGKey(0)
    k_par, k_sup, k_tgt, k_ty = jax.random.split(key, 4)
    params = init_params(k_par)

    support_images = jax.random.normal(k_sup, (B, S, imgc, imgsz, imgsz),
                                       jnp.float32)
    target_image = jax.random.normal(k_tgt, (B, imgc, imgsz, imgsz),
                                     jnp.float32)
    support_y = jnp.tile(jnp.arange(n_way, dtype=jnp.int32), (B, k_spt))  # (B, S)
    target_y = jax.random.randint(k_ty, (B,), 0, n_way, dtype=jnp.int32)

    acc, loss = matching_network_forward(params, support_images, support_y,
                                         target_image, target_y, n_way)
    jax.block_until_ready((acc, loss))
    print("KERNEL_OK")
</pallas_src>

<mosaic_0001>
module attributes {stable_mosaic.version = 11 : i64} {
  func.func @conv_block_kernel(%arg0: i32, %arg1: memref<1536x9xbf16, #tpu.memory_space<vmem>>, %arg2: memref<9x64xbf16, #tpu.memory_space<vmem>>, %arg3: memref<1x64xf32, #tpu.memory_space<vmem>>, %arg4: memref<1x64xf32, #tpu.memory_space<vmem>>, %arg5: memref<1x64xf32, #tpu.memory_space<vmem>>, %arg6: memref<384x64xf32, #tpu.memory_space<vmem>>) attributes {dimension_semantics = [#tpu.dimension_semantics<parallel>], iteration_bounds = array<i64: 2>, scalar_prefetch = 0 : i64, scratch_operands = 0 : i64, tpu.core_type = #tpu.core_type<tc>, window_params = [{transform_indices = @transform_0, window_bounds = array<i64: 1536, 9>}, {pipeline_mode = #tpu.pipeline_mode<synchronous>, transform_indices = @transform_1, window_bounds = array<i64: 9, 64>}, {pipeline_mode = #tpu.pipeline_mode<synchronous>, transform_indices = @transform_2, window_bounds = array<i64: 1, 64>}, {pipeline_mode = #tpu.pipeline_mode<synchronous>, transform_indices = @transform_3, window_bounds = array<i64: 1, 64>}, {pipeline_mode = #tpu.pipeline_mode<synchronous>, transform_indices = @transform_4, window_bounds = array<i64: 1, 64>}, {transform_indices = @transform_5, window_bounds = array<i64: 384, 64>}]} {
    %c0 = arith.constant 0 : index
    %c0_0 = arith.constant 0 : index
    %0 = vector.load %arg1[%c0, %c0_0] : memref<1536x9xbf16, #tpu.memory_space<vmem>>, vector<1536x9xbf16>
    %c0_1 = arith.constant 0 : index
    %c0_2 = arith.constant 0 : index
    %1 = vector.load %arg2[%c0_1, %c0_2] : memref<9x64xbf16, #tpu.memory_space<vmem>>, vector<9x64xbf16>
    %cst = arith.constant dense<0.000000e+00> : vector<1536x64xf32>
    %2 = tpu.matmul %0, %1, %cst {dimension_numbers = #tpu.dot_dimension_numbers<[1], [0], [0], [1], [0, 0, 1, 1], [], []>} : vector<1536x9xbf16>, vector<9x64xbf16>, vector<1536x64xf32> -> vector<1536x64xf32>
    %c0_3 = arith.constant 0 : index
    %c0_4 = arith.constant 0 : index
    %3 = vector.load %arg3[%c0_3, %c0_4] : memref<1x64xf32, #tpu.memory_space<vmem>>, vector<1x64xf32>
    %4 = vector.broadcast %3 : vector<1x64xf32> to vector<1536x64xf32>
    %5 = arith.addf %2, %4 : vector<1536x64xf32>
    %cst_5 = arith.constant 0.000000e+00 : f32
    %6 = vector.broadcast %cst_5 : f32 to vector<1536x64xf32>
    %7 = arith.maximumf %5, %6 : vector<1536x64xf32>
    %c0_6 = arith.constant 0 : index
    %c0_7 = arith.constant 0 : index
    %8 = vector.load %arg4[%c0_6, %c0_7] : memref<1x64xf32, #tpu.memory_space<vmem>>, vector<1x64xf32>
    %9 = vector.broadcast %8 : vector<1x64xf32> to vector<1536x64xf32>
    %10 = arith.mulf %7, %9 : vector<1536x64xf32>
    %c0_8 = arith.constant 0 : index
    %c0_9 = arith.constant 0 : index
    %11 = vector.load %arg5[%c0_8, %c0_9] : memref<1x64xf32, #tpu.memory_space<vmem>>, vector<1x64xf32>
    %12 = vector.broadcast %11 : vector<1x64xf32> to vector<1536x64xf32>
    %13 = arith.addf %10, %12 : vector<1536x64xf32>
    %14 = vector.extract_strided_slice %13 {offsets = [0, 0], sizes = [384, 64], strides = [1, 1]} : vector<1536x64xf32> to vector<384x64xf32>
    %15 = vector.extract_strided_slice %13 {offsets = [384, 0], sizes = [384, 64], strides = [1, 1]} : vector<1536x64xf32> to vector<384x64xf32>
    %16 = arith.maximumf %14, %15 : vector<384x64xf32>
    %17 = vector.extract_strided_slice %13 {offsets = [768, 0], sizes = [384, 64], strides = [1, 1]} : vector<1536x64xf32> to vector<384x64xf32>
    %18 = vector.extract_strided_slice %13 {offsets = [1152, 0], sizes = [384, 64], strides = [1, 1]} : vector<1536x64xf32> to vector<384x64xf32>
    %19 = arith.maximumf %17, %18 : vector<384x64xf32>
    %20 = arith.maximumf %16, %19 : vector<384x64xf32>
    %c0_10 = arith.constant 0 : index
    %c0_11 = arith.constant 0 : index
    %21 = vector.load %arg6[%c0_10, %c0_11] : memref<384x64xf32, #tpu.memory_space<vmem>>, vector<384x64xf32>
    tpu.vector_store %arg6[%c0_10, %c0_11], %20 {strides = array<i32>} : memref<384x64xf32, #tpu.memory_space<vmem>>, vector<384x64xf32>,
    return
  }
  func.func @transform_0(%arg0: i32) -> (i32, i32) {
    %c0_i32 = arith.constant 0 : i32
    %c0_i32_0 = arith.constant 0 : i32
    return %arg0, %c0_i32 : i32, i32
  }
  func.func @transform_1(%arg0: i32) -> (i32, i32) {
    %c0_i32 = arith.constant 0 : i32
    %c0_i32_0 = arith.constant 0 : i32
    %c0_i32_1 = arith.constant 0 : i32
    return %c0_i32, %c0_i32_0 : i32, i32
  }
  func.func @transform_2(%arg0: i32) -> (i32, i32) {
    %c0_i32 = arith.constant 0 : i32
    %c0_i32_0 = arith.constant 0 : i32
    %c0_i32_1 = arith.constant 0 : i32
    return %c0_i32, %c0_i32_0 : i32, i32
  }
  func.func @transform_3(%arg0: i32) -> (i32, i32) {
    %c0_i32 = arith.constant 0 : i32
    %c0_i32_0 = arith.constant 0 : i32
    %c0_i32_1 = arith.constant 0 : i32
    return %c0_i32, %c0_i32_0 : i32, i32
  }
  func.func @transform_4(%arg0: i32) -> (i32, i32) {
    %c0_i32 = arith.constant 0 : i32
    %c0_i32_0 = arith.constant 0 : i32
    %c0_i32_1 = arith.constant 0 : i32
    return %c0_i32, %c0_i32_0 : i32, i32
  }
  func.func @transform_5(%arg0: i32) -> (i32, i32) {
    %c0_i32 = arith.constant 0 : i32
    %c0_i32_0 = arith.constant 0 : i32
    return %arg0, %c0_i32 : i32, i32
  }
}

</mosaic_0001>

<bundles_post_ra>
// kernel: tpu_custom_call.1
= control target key start
LH: loop header
LB: loop body
LE: loop exit
PB: predicated region body
PF: predicated region fallthrough
CT: control target
= control target key end

     0   :  { %s3180_s18 = smov 0   ;;  %s4120_s0 = inlined_call_operand.vmem [shape: bf16[3072,9], index: 0, kind: input, shape index: {}]   ;;  %s4121_s1 = inlined_call_operand.vmem [shape: bf16[9,64], index: 1, kind: input, shape index: {}]   ;;  %s4122_s2 = inlined_call_operand.vmem [shape: f32[1,64], index: 2, kind: input, shape index: {}]   ;;  %s4123_s3 = inlined_call_operand.vmem [shape: f32[1,64], index: 3, kind: input, shape index: {}]   ;;  %s4124_s4 = inlined_call_operand.vmem [shape: f32[1,64], index: 4, kind: input, shape index: {}]   ;;  %s4125_s5 = inlined_call_operand.vmem [shape: f32[768,64], index: 5, kind: output, shape index: {}]  }
   0x1 LB: > { %s2530_s19 = sadd.s32 4294967295, %s3147_s18   ;;  %p2534_p0 = scmp.ge.s32.totalorder %s3147_s18, 1  ;;  %s3147_s18 = sphi %s3180_s18, %s15_s18  }
   0x2   : > { %p188_p1 = scmp.lt.s32.totalorder %s3147_s18, 3 }
   0x4   : > { %p189_p2 = pnand %p2534_p0, %p188_p1 }
   0x5   : > { %s216_s24 = smul.u32 (!%p189_p2), 192, %s2530_s19 }
   0x6   : > { %192 = sbr.rel (%p189_p2) target bundleno = 542 (0x21e), region = 40 }
   0x7   : > { %p217_p3 = scmp.lt.s32.totalorder (!%p189_p2), %s216_s24, 383  ;;  %s222_s8 = smul.u32 (!%p189_p2), 48, %s2530_s19 }
   0x9   : > { %p223_p4 = scmp.lt.s32.totalorder (!%p189_p2), %s222_s8, 95 }
   0xb   : > { %v2923_v0 = vld [vmem:[%s4121_s1] sm:$0xf]  ;;  %v3119_v1 = vld [vmem:[%s4121_s1] sm:$0x10]  ;;  %vm1201_vm0 = vcmask 1043456   ;;  %vm1202_vm1 = vcmask 1044480  }
   0xc   : > { %v2924_v2 = vor.u32 %v3119_v1, %v2923_v0  ;;  %v3149_v3 = vmov 65535   ;;  %s4127_s24 = smov (!%p217_p3, %s216_s24), 383  ;;  %vm912_vm2 = vcmask 72704   ;;  %v3268_v39 = vld [vmem:[%s4122_s2] ss:$0 sm:$0xff]  ;;  %s4129_s8 = smov (!%p223_p4, %s222_s8), 95 }
   0xd   : > { %v1203_v4 = vsel %vm1201_vm0, 4294967295, %v3149_v3  ;;  %s2535_s25 = sshll.u32 %s4127_s24, 2  ;;  %v3279_v48 = vld [vmem:[%s4123_s3] ss:$0 sm:$0xff]  ;;  %s2536_s11 = sshll.u32 %s4129_s8, 3  ;;  %vm2425_vm3 = vcmask 523264  }
   0xe   : > { %v1204_v5 = vsel %vm1202_vm1, %v1203_v4, 0  ;;  %s3199_s28 = scalar_lea.vmem %s4120_s0, %s2535_s25  ;;  %v3291_v52 = vld [vmem:[%s4124_s4] ss:$0 sm:$0xff]  ;;  %s3315_s14 = scalar_lea.vmem %s4125_s5, %s2536_s11 }
   0xf   : > { %v1206_v6 = vand.u32 %v2924_v2, %v1204_v5  ;;  %v3023_v7 = vld [vmem:[%s3199_s28] sm:$0xff]  ;;  %v3024_v11 = vld [vmem:[%s3199_s28 + $0x8] sm:$0xff]  ;;  %v3025_v15 = vld [vmem:[%s3199_s28 + $0x10] sm:$0xff] }
  0x10   : > { %v3047_v8 = vld [vmem:[%s3199_s28 + $0xc0] sm:$0xff]  ;;  %v3048_v12 = vld [vmem:[%s3199_s28 + $0xc8] sm:$0xff]  ;;  %v3049_v16 = vld [vmem:[%s3199_s28 + $0xd0] sm:$0xff] }
  0x11   : > { %1215 = vmatpush.bf16.msra.mxu0 %v1206_v6  ;;  %3120 = vmatpush.bf16.msra.mxu1 %v1206_v6  ;;  %v3071_v9 = vld [vmem:[%s3199_s28 + $0x180] sm:$0xff]  ;;  %v3072_v13 = vld [vmem:[%s3199_s28 + $0x188] sm:$0xff]  ;;  %v3073_v17 = vld [vmem:[%s3199_s28 + $0x190] sm:$0xff] }
  0x12   : > { %3121 = vmatpush.bf16.msra.mxu2 %v1206_v6  ;;  %3122 = vmatpush.bf16.msra.mxu3 %v1206_v6  ;;  %v3095_v10 = vld [vmem:[%s3199_s28 + $0x240] sm:$0xff]  ;;  %v3096_v14 = vld [vmem:[%s3199_s28 + $0x248] sm:$0xff]  ;;  %v3097_v18 = vld [vmem:[%s3199_s28 + $0x250] sm:$0xff] }
  0x13   : > { %v3026_v19 = vld [vmem:[%s3199_s28 + $0x18] sm:$0xff]  ;;  %v3027_v23 = vld [vmem:[%s3199_s28 + $0x20] sm:$0xff]  ;;  %v3028_v27 = vld [vmem:[%s3199_s28 + $0x28] sm:$0xff] }
  0x14   : > { %2925 = vmatmul.msk.bf16.vlgmr.msra.gmra.mxu0 %vm912_vm2, %v3023_v7  ;;  %2949 = vmatmul.msk.bf16.vlgmr.msra.gmra.mxu1 %vm912_vm2, %v3047_v8  ;;  %v3050_v20 = vld [vmem:[%s3199_s28 + $0xd8] sm:$0xff]  ;;  %v3051_v24 = vld [vmem:[%s3199_s28 + $0xe0] sm:$0xff]  ;;  %v3052_v28 = vld [vmem:[%s3199_s28 + $0xe8] sm:$0xff] }
  0x15   : > { %2973 = vmatmul.msk.bf16.vlgmr.msra.gmra.mxu2 %vm912_vm2, %v3071_v9  ;;  %2997 = vmatmul.msk.bf16.vlgmr.msra.gmra.mxu3 %vm912_vm2, %v3095_v10  ;;  %v3074_v21 = vld [vmem:[%s3199_s28 + $0x198] sm:$0xff]  ;;  %v3075_v25 = vld [vmem:[%s3199_s28 + $0x1a0] sm:$0xff]  ;;  %v3076_v29 = vld [vmem:[%s3199_s28 + $0x1a8] sm:$0xff] }
  0x16   : > { %v3098_v22 = vld [vmem:[%s3199_s28 + $0x258] sm:$0xff]  ;;  %v3099_v26 = vld [vmem:[%s3199_s28 + $0x260] sm:$0xff]  ;;  %v3100_v30 = vld [vmem:[%s3199_s28 + $0x268] sm:$0xff] }
  0x17   : > { %v3029_v31 = vld [vmem:[%s3199_s28 + $0x30] sm:$0xff]  ;;  %v3030_v35 = vld [vmem:[%s3199_s28 + $0x38] sm:$0xff]  ;;  %v3031_v40 = vld [vmem:[%s3199_s28 + $0x40] sm:$0xff] }
  0x18   : > { %v3053_v32 = vld [vmem:[%s3199_s28 + $0xf0] sm:$0xff]  ;;  %v3054_v36 = vld [vmem:[%s3199_s28 + $0xf8] sm:$0xff]  ;;  %v3055_v41 = vld [vmem:[%s3199_s28 + $0x100] sm:$0xff] }
  0x19   : > { %v3077_v33 = vld [vmem:[%s3199_s28 + $0x1b0] sm:$0xff]  ;;  %v3078_v37 = vld [vmem:[%s3199_s28 + $0x1b8] sm:$0xff]  ;;  %v3079_v44 = vld [vmem:[%s3199_s28 + $0x1c0] sm:$0xff] }
  0x1a   : > { %v3101_v34 = vld [vmem:[%s3199_s28 + $0x270] sm:$0xff]  ;;  %v3102_v38 = vld [vmem:[%s3199_s28 + $0x278] sm:$0xff]  ;;  %v3103_v45 = vld [vmem:[%s3199_s28 + $0x280] sm:$0xff] }
  0x24   : > { %2926 = vmatmul.msk.bf16.gmra.mxu0 %vm912_vm2, %v3024_v11  ;;  %2950 = vmatmul.msk.bf16.gmra.mxu1 %vm912_vm2, %v3048_v12  ;;  %v3032_v12 = vld [vmem:[%s3199_s28 + $0x48] sm:$0xff] }
  0x25   : > { %2974 = vmatmul.msk.bf16.gmra.mxu2 %vm912_vm2, %v3072_v13  ;;  %2998 = vmatmul.msk.bf16.gmra.mxu3 %vm912_vm2, %v3096_v14  ;;  %v3056_v13 = vld [vmem:[%s3199_s28 + $0x108] sm:$0xff] }
  0x34   : > { %2927 = vmatmul.msk.bf16.gmra.mxu0 %vm912_vm2, %v3025_v15  ;;  %2951 = vmatmul.msk.bf16.gmra.mxu1 %vm912_vm2, %v3049_v16 }
  0x35   : > { %2975 = vmatmul.msk.bf16.gmra.mxu2 %vm912_vm2, %v3073_v17  ;;  %2999 = vmatmul.msk.bf16.gmra.mxu3 %vm912_vm2, %v3097_v18 }
  0x44   : > { %2928 = vmatmul.msk.bf16.gmra.mxu0 %vm912_vm2, %v3026_v19  ;;  %2952 = vmatmul.msk.bf16.gmra.mxu1 %vm912_vm2, %v3050_v20  ;;  %v3080_v20 = vld [vmem:[%s3199_s28 + $0x1c8] sm:$0xff] }
  0x45   : > { %2976 = vmatmul.msk.bf16.gmra.mxu2 %vm912_vm2, %v3074_v21  ;;  %3000 = vmatmul.msk.bf16.gmra.mxu3 %vm912_vm2, %v3098_v22  ;;  %v3104_v21 = vld [vmem:[%s3199_s28 + $0x288] sm:$0xff] }
  0x54   : > { %2929 = vmatmul.msk.bf16.gmra.mxu0 %vm912_vm2, %v3027_v23  ;;  %2953 = vmatmul.msk.bf16.gmra.mxu1 %vm912_vm2, %v3051_v24 }
  0x55   : > { %2977 = vmatmul.msk.bf16.gmra.mxu2 %vm912_vm2, %v3075_v25  ;;  %3001 = vmatmul.msk.bf16.gmra.mxu3 %vm912_vm2, %v3099_v26 }
  0x64   : > { %2930 = vmatmul.msk.bf16.gmra.mxu0 %vm912_vm2, %v3028_v27  ;;  %2954 = vmatmul.msk.bf16.gmra.mxu1 %vm912_vm2, %v3052_v28 }
  0x65   : > { %2978 = vmatmul.msk.bf16.gmra.mxu2 %vm912_vm2, %v3076_v29  ;;  %3002 = vmatmul.msk.bf16.gmra.mxu3 %vm912_vm2, %v3100_v30 }
  0x74   : > { %2931 = vmatmul.msk.bf16.gmra.mxu0 %vm912_vm2, %v3029_v31  ;;  %2955 = vmatmul.msk.bf16.gmra.mxu1 %vm912_vm2, %v3053_v32 }
  0x75   : > { %2979 = vmatmul.msk.bf16.gmra.mxu2 %vm912_vm2, %v3077_v33  ;;  %3003 = vmatmul.msk.bf16.gmra.mxu3 %vm912_vm2, %v3101_v34 }
  0x84   : > { %2932 = vmatmul.msk.bf16.gmra.mxu0 %vm912_vm2, %v3030_v35  ;;  %2956 = vmatmul.msk.bf16.gmra.mxu1 %vm912_vm2, %v3054_v36 }
  0x85   : > { %2980 = vmatmul.msk.bf16.gmra.mxu2 %vm912_vm2, %v3078_v37  ;;  %3004 = vmatmul.msk.bf16.gmra.mxu3 %vm912_vm2, %v3102_v38 }
  0x91   : > { %v1217_v42 = vpop.f32.mrf.mxu0  ;;  %v1337_v43 = vpop.f32.mrf.mxu1 }
  0x92   : > { %v1218_v46 = vadd.f32 %v3268_v39, %v1217_v42  ;;  %v1338_v47 = vadd.f32 %v3268_v39, %v1337_v43 }
  0x94   : > { %v1697_v49 = vmax.f32 %v1218_v46, 0.0  ;;  %v1745_v50 = vmax.f32 %v1338_v47, 0.0  ;;  %2933 = vmatmul.msk.bf16.gmra.mxu0 %vm912_vm2, %v3031_v40  ;;  %2957 = vmatmul.msk.bf16.gmra.mxu1 %vm912_vm2, %v3055_v41 }
  0x95   : > { %2981 = vmatmul.msk.bf16.gmra.mxu2 %vm912_vm2, %v3079_v44  ;;  %3005 = vmatmul.msk.bf16.gmra.mxu3 %vm912_vm2, %v3103_v45 }
  0x96   : > { %v1893_v51 = vmul.f32 %v3279_v48, %v1697_v49  ;;  %v1941_v53 = vmul.f32 %v3279_v48, %v1745_v50 }
  0x98   : > { %v1457_v54 = vpop.f32.mrf.mxu2  ;;  %v1577_v55 = vpop.f32.mrf.mxu3  ;;  %v2089_v62 = vadd.f32 %v3291_v52, %v1893_v51  ;;  %v2137_v63 = vadd.f32 %v3291_v52, %v1941_v53 }
  0x99   : > { %v1458_v56 = vadd.f32 %v3268_v39, %v1457_v54  ;;  %v1578_v57 = vadd.f32 %v3268_v39, %v1577_v55  ;;  %v1219_v58 = vpop.f32.mrf.mxu0  ;;  %v1339_v59 = vpop.f32.mrf.mxu1 }
  0x9a   : > { %v1220_v60 = vadd.f32 %v3268_v39, %v1219_v58  ;;  %v1340_v61 = vadd.f32 %v3268_v39, %v1339_v59  ;;  %v2281_v6 = vmax.f32 %v2089_v62, %v2137_v63 }
  0x9b   : > { %v1793_v0 = vmax.f32 %v1458_v56, 0.0  ;;  %v1841_v1 = vmax.f32 %v1578_v57, 0.0 }
  0x9c   : > { %v1698_v2 = vmax.f32 %v1220_v60, 0.0  ;;  %v1746_v5 = vmax.f32 %v1340_v61, 0.0 }
  0x9d   : > { %v1989_v3 = vmul.f32 %v3279_v48, %v1793_v0  ;;  %v2037_v4 = vmul.f32 %v3279_v48, %v1841_v1  ;;  %v3033_v1 = vld [vmem:[%s3199_s28 + $0x50] sm:$0xff] }
  0x9e   : > { %v1894_v9 = vmul.f32 %v3279_v48, %v1698_v2  ;;  %v1942_v15 = vmul.f32 %v3279_v48, %v1746_v5  ;;  %v3057_v2 = vld [vmem:[%s3199_s28 + $0x110] sm:$0xff] }
  0x9f   : > { %v2185_v7 = vadd.f32 %v3291_v52, %v1989_v3  ;;  %v2233_v8 = vadd.f32 %v3291_v52, %v2037_v4 }
  0xa0   : > { %v1459_v10 = vpop.f32.mrf.mxu2  ;;  %v1579_v11 = vpop.f32.mrf.mxu3  ;;  %v2090_v27 = vadd.f32 %v3291_v52, %v1894_v9  ;;  %v2138_v30 = vadd.f32 %v3291_v52, %v1942_v15  ;;  %v3081_v9 = vld [vmem:[%s3199_s28 + $0x1d0] sm:$0xff] }
  0xa1   : > { %v2329_v14 = vmax.f32 %v2185_v7, %v2233_v8  ;;  %v1460_v16 = vadd.f32 %v3268_v39, %v1459_v10  ;;  %v1580_v17 = vadd.f32 %v3268_v39, %v1579_v11  ;;  %v1222_v18 = vpop.f32.mrf.mxu0  ;;  %v1342_v19 = vpop.f32.mrf.mxu1  ;;  %v3105_v10 = vld [vmem:[%s3199_s28 + $0x290] sm:$0xff] }
  0xa2   : > { %v1223_v22 = vadd.f32 %v3268_v39, %v1222_v18  ;;  %v1343_v23 = vadd.f32 %v3268_v39, %v1342_v19  ;;  %v2282_v40 = vmax.f32 %v2090_v27, %v2138_v30 }
  0xa3   : > { %v2377_v24 = vmax.f32 %v2281_v6, %v2329_v14  ;;  %v1794_v25 = vmax.f32 %v1460_v16, 0.0  ;;  %v1842_v26 = vmax.f32 %v1580_v17, 0.0 }
  0xa4   : > { %v1699_v28 = vmax.f32 %v1223_v22, 0.0  ;;  %v1747_v29 = vmax.f32 %v1343_v23, 0.0  ;;  %2934 = vmatmul.msk.bf16.gmra.mxu0 %vm912_vm2, %v3032_v12  ;;  %2958 = vmatmul.msk.bf16.gmra.mxu1 %vm912_vm2, %v3056_v13 }
  0xa5   : > { %2426 = vst.msk [vmem:[%s3315_s14] sm:$0xff] %vm2425_vm3, %v2377_v24  ;;  %v1990_v31 = vmul.f32 %v3279_v48, %v1794_v25  ;;  %v2038_v32 = vmul.f32 %v3279_v48, %v1842_v26  ;;  %2982 = vmatmul.msk.bf16.gmra.mxu2 %vm912_vm2, %v3080_v20  ;;  %3006 = vmatmul.msk.bf16.gmra.mxu3 %vm912_vm2, %v3104_v21 }
  0xa6   : > { %v1895_v33 = vmul.f32 %v3279_v48, %v1699_v28  ;;  %v1943_v36 = vmul.f32 %v3279_v48, %v1747_v29 }
  0xa7   : > { %v2186_v34 = vadd.f32 %v3291_v52, %v1990_v31  ;;  %v2234_v35 = vadd.f32 %v3291_v52, %v2038_v32 }
  0xa8   : > { %v1462_v37 = vpop.f32.mrf.mxu2  ;;  %v1582_v38 = vpop.f32.mrf.mxu3  ;;  %v2091_v46 = vadd.f32 %v3291_v52, %v1895_v33  ;;  %v2139_v51 = vadd.f32 %v3291_v52, %v1943_v36 }
  0xa9   : > { %v2330_v41 = vmax.f32 %v2186_v34, %v2234_v35  ;;  %v1463_v42 = vadd.f32 %v3268_v39, %v1462_v37  ;;  %v1583_v43 = vadd.f32 %v3268_v39, %v1582_v38  ;;  %v1224_v44 = vpop.f32.mrf.mxu0  ;;  %v1344_v45 = vpop.f32.mrf.mxu1 }
  0xaa   : > { %v1225_v47 = vadd.f32 %v3268_v39, %v1224_v44  ;;  %v1345_v49 = vadd.f32 %v3268_v39, %v1344_v45  ;;  %v2283_v59 = vmax.f32 %v2091_v46, %v2139_v51 }
  0xab   : > { %v2378_v50 = vmax.f32 %v2282_v40, %v2330_v41  ;;  %v1795_v53 = vmax.f32 %v1463_v42, 0.0  ;;  %v1843_v54 = vmax.f32 %v1583_v43, 0.0 }
  0xac   : > { %v1700_v55 = vmax.f32 %v1225_v47, 0.0  ;;  %v1748_v58 = vmax.f32 %v1345_v49, 0.0 }
  0xad   : > { %2427 = vst.msk [vmem:[%s3315_s14 + $0x8] sm:$0xff] %vm2425_vm3, %v2378_v50  ;;  %v1991_v56 = vmul.f32 %v3279_v48, %v1795_v53  ;;  %v2039_v57 = vmul.f32 %v3279_v48, %v1843_v54  ;;  %v3034_v54 = vld [vmem:[%s3199_s28 + $0x58] sm:$0xff] }
  0xae   : > { %v1896_v62 = vmul.f32 %v3279_v48, %v1700_v55  ;;  %v1944_v4 = vmul.f32 %v3279_v48, %v1748_v58  ;;  %v3058_v55 = vld [vmem:[%s3199_s28 + $0x118] sm:$0xff] }
  0xaf   : > { %v2187_v60 = vadd.f32 %v3291_v52, %v1991_v56  ;;  %v2235_v61 = vadd.f32 %v3291_v52, %v2039_v57 }
  0xb0   : > { %v1464_v63 = vpop.f32.mrf.mxu2  ;;  %v1584_v0 = vpop.f32.mrf.mxu3  ;;  %v2092_v16 = vadd.f32 %v3291_v52, %v1896_v62  ;;  %v2140_v19 = vadd.f32 %v3291_v52, %v1944_v4  ;;  %v3082_v62 = vld [vmem:[%s3199_s28 + $0x1d8] sm:$0xff] }
  0xb1   : > { %v2331_v3 = vmax.f32 %v2187_v60, %v2235_v61  ;;  %v1465_v5 = vadd.f32 %v3268_v39, %v1464_v63  ;;  %v1585_v6 = vadd.f32 %v3268_v39, %v1584_v0  ;;  %v1227_v7 = vpop.f32.mrf.mxu0  ;;  %v1347_v8 = vpop.f32.mrf.mxu1  ;;  %v3106_v63 = vld [vmem:[%s3199_s28 + $0x298] sm:$0xff] }
  0xb2   : > { %v1228_v11 = vadd.f32 %v3268_v39, %v1227_v7  ;;  %v1348_v12 = vadd.f32 %v3268_v39, %v1347_v8  ;;  %v2284_v28 = vmax.f32 %v2092_v16, %v2140_v19 }
  0xb3   : > { %v2379_v13 = vmax.f32 %v2283_v59, %v2331_v3  ;;  %v1796_v14 = vmax.f32 %v1465_v5, 0.0  ;;  %v1844_v15 = vmax.f32 %v1585_v6, 0.0 }
  0xb4   : > { %v1701_v17 = vmax.f32 %v1228_v11, 0.0  ;;  %v1749_v18 = vmax.f32 %v1348_v12, 0.0  ;;  %2935 = vmatmul.msk.bf16.gmra.mxu0 %vm912_vm2, %v3033_v1  ;;  %2959 = vmatmul.msk.bf16.gmra.mxu1 %vm912_vm2, %v3057_v2 }
  0xb5   : > { %2428 = vst.msk [vmem:[%s3315_s14 + $0x10] sm:$0xff] %vm2425_vm3, %v2379_v13  ;;  %v1992_v20 = vmul.f32 %v3279_v48, %v1796_v14  ;;  %v2040_v21 = vmul.f32 %v3279_v48, %v1844_v15  ;;  %2983 = vmatmul.msk.bf16.gmra.mxu2 %vm912_vm2, %v3081_v9  ;;  %3007 = vmatmul.msk.bf16.gmra.mxu3 %vm912_vm2, %v3105_v10 }
  0xb6   : > { %v1897_v22 = vmul.f32 %v3279_v48, %v1701_v17  ;;  %v1945_v25 = vmul.f32 %v3279_v48, %v1749_v18 }
  0xb7   : > { %v2188_v23 = vadd.f32 %v3291_v52, %v1992_v20  ;;  %v2236_v24 = vadd.f32 %v3291_v52, %v2040_v21 }
  0xb8   : > { %v1467_v26 = vpop.f32.mrf.mxu2  ;;  %v1587_v27 = vpop.f32.mrf.mxu3  ;;  %v2093_v34 = vadd.f32 %v3291_v52, %v1897_v22  ;;  %v2141_v38 = vadd.f32 %v3291_v52, %v1945_v25 }
  0xb9   : > { %v2332_v29 = vmax.f32 %v2188_v23, %v2236_v24  ;;  %v1468_v30 = vadd.f32 %v3268_v39, %v1467_v26  ;;  %v1588_v31 = vadd.f32 %v3268_v39, %v1587_v27  ;;  %v1229_v32 = vpop.f32.mrf.mxu0  ;;  %v1349_v33 = vpop.f32.mrf.mxu1 }
  0xba   : > { %v1230_v35 = vadd.f32 %v3268_v39, %v1229_v32  ;;  %v1350_v36 = vadd.f32 %v3268_v39, %v1349_v33  ;;  %v2285_v46 = vmax.f32 %v2093_v34, %v2141_v38 }
  0xbb   : > { %v2380_v37 = vmax.f32 %v2284_v28, %v2332_v29  ;;  %v1797_v40 = vmax.f32 %v1468_v30, 0.0  ;;  %v1845_v41 = vmax.f32 %v1588_v31, 0.0 }
  0xbc   : > { %v1702_v42 = vmax.f32 %v1230_v35, 0.0  ;;  %v1750_v45 = vmax.f32 %v1350_v36, 0.0 }
  0xbd   : > { %2429 = vst.msk [vmem:[%s3315_s14 + $0x18] sm:$0xff] %vm2425_vm3, %v2380_v37  ;;  %v1993_v43 = vmul.f32 %v3279_v48, %v1797_v40  ;;  %v2041_v44 = vmul.f32 %v3279_v48, %v1845_v41  ;;  %v3035_v41 = vld [vmem:[%s3199_s28 + $0x60] sm:$0xff] }
  0xbe   : > { %v1898_v50 = vmul.f32 %v3279_v48, %v1702_v42  ;;  %v1946_v57 = vmul.f32 %v3279_v48, %v1750_v45  ;;  %v3059_v42 = vld [vmem:[%s3199_s28 + $0x120] sm:$0xff] }
  0xbf   : > { %v2189_v47 = vadd.f32 %v3291_v52, %v1993_v43  ;;  %v2237_v49 = vadd.f32 %v3291_v52, %v2041_v44 }
  0xc0   : > { %v1469_v51 = vpop.f32.mrf.mxu2  ;;  %v1589_v53 = vpop.f32.mrf.mxu3  ;;  %v2094_v5 = vadd.f32 %v3291_v52, %v1898_v50  ;;  %v2142_v8 = vadd.f32 %v3291_v52, %v1946_v57  ;;  %v3083_v50 = vld [vmem:[%s3199_s28 + $0x1e0] sm:$0xff] }
  0xc1   : > { %v2333_v56 = vmax.f32 %v2189_v47, %v2237_v49  ;;  %v1470_v58 = vadd.f32 %v3268_v39, %v1469_v51  ;;  %v1590_v59 = vadd.f32 %v3268_v39, %v1589_v53  ;;  %v1232_v60 = vpop.f32.mrf.mxu0  ;;  %v1352_v61 = vpop.f32.mrf.mxu1  ;;  %v3107_v51 = vld [vmem:[%s3199_s28 + $0x2a0] sm:$0xff] }
  0xc2   : > { %v1233_v0 = vadd.f32 %v3268_v39, %v1232_v60  ;;  %v1353_v1 = vadd.f32 %v3268_v39, %v1352_v61  ;;  %v2286_v17 = vmax.f32 %v2094_v5, %v2142_v8 }
  0xc3   : > { %v2381_v2 = vmax.f32 %v2285_v46, %v2333_v56  ;;  %v1798_v3 = vmax.f32 %v1470_v58, 0.0  ;;  %v1846_v4 = vmax.f32 %v1590_v59, 0.0 }
  0xc4   : > { %v1703_v6 = vmax.f32 %v1233_v0, 0.0  ;;  %v1751_v7 = vmax.f32 %v1353_v1, 0.0  ;;  %2936 = vmatmul.msk.bf16.gmra.mxu0 %vm912_vm2, %v3034_v54  ;;  %2960 = vmatmul.msk.bf16.gmra.mxu1 %vm912_vm2, %v3058_v55 }
  0xc5   : > { %2430 = vst.msk [vmem:[%s3315_s14 + $0x20] sm:$0xff] %vm2425_vm3, %v2381_v2  ;;  %v1994_v9 = vmul.f32 %v3279_v48, %v1798_v3  ;;  %v2042_v10 = vmul.f32 %v3279_v48, %v1846_v4  ;;  %2984 = vmatmul.msk.bf16.gmra.mxu2 %vm912_vm2, %v3082_v62  ;;  %3008 = vmatmul.msk.bf16.gmra.mxu3 %vm912_vm2, %v3106_v63 }
  0xc6   : > { %v1899_v11 = vmul.f32 %v3279_v48, %v1703_v6  ;;  %v1947_v14 = vmul.f32 %v3279_v48, %v1751_v7 }
  0xc7   : > { %v2190_v12 = vadd.f32 %v3291_v52, %v1994_v9  ;;  %v2238_v13 = vadd.f32 %v3291_v52, %v2042_v10 }
  0xc8   : > { %v1472_v15 = vpop.f32.mrf.mxu2  ;;  %v1592_v16 = vpop.f32.mrf.mxu3  ;;  %v2095_v23 = vadd.f32 %v3291_v52, %v1899_v11  ;;  %v2143_v27 = vadd.f32 %v3291_v52, %v1947_v14 }
  0xc9   : > { %v2334_v18 = vmax.f32 %v2190_v12, %v2238_v13  ;;  %v1473_v19 = vadd.f32 %v3268_v39, %v1472_v15  ;;  %v1593_v20 = vadd.f32 %v3268_v39, %v1592_v16  ;;  %v1234_v21 = vpop.f32.mrf.mxu0  ;;  %v1354_v22 = vpop.f32.mrf.mxu1 }
  0xca   : > { %v1235_v24 = vadd.f32 %v3268_v39, %v1234_v21  ;;  %v1355_v25 = vadd.f32 %v3268_v39, %v1354_v22  ;;  %v2287_v34 = vmax.f32 %v2095_v23, %v2143_v27 }
  0xcb   : > { %v2382_v26 = vmax.f32 %v2286_v17, %v2334_v18  ;;  %v1799_v28 = vmax.f32 %v1473_v19, 0.0  ;;  %v1847_v29 = vmax.f32 %v1593_v20, 0.0 }
  0xcc   : > { %v1704_v30 = vmax.f32 %v1235_v24, 0.0  ;;  %v1752_v33 = vmax.f32 %v1355_v25, 0.0 }
  0xcd   : > { %2431 = vst.msk [vmem:[%s3315_s14 + $0x28] sm:$0xff] %vm2425_vm3, %v2382_v26  ;;  %v1995_v31 = vmul.f32 %v3279_v48, %v1799_v28  ;;  %v2043_v32 = vmul.f32 %v3279_v48, %v1847_v29  ;;  %v3036_v29 = vld [vmem:[%s3199_s28 + $0x68] sm:$0xff] }
  0xce   : > { %v1900_v37 = vmul.f32 %v3279_v48, %v1704_v30  ;;  %v1948_v44 = vmul.f32 %v3279_v48, %v1752_v33  ;;  %v3060_v30 = vld [vmem:[%s3199_s28 + $0x128] sm:$0xff] }
  0xcf   : > { %v2191_v35 = vadd.f32 %v3291_v52, %v1995_v31  ;;  %v2239_v36 = vadd.f32 %v3291_v52, %v2043_v32 }
  0xd0   : > { %v1474_v38 = vpop.f32.mrf.mxu2  ;;  %v1594_v40 = vpop.f32.mrf.mxu3  ;;  %v2096_v58 = vadd.f32 %v3291_v52, %v1900_v37  ;;  %v2144_v61 = vadd.f32 %v3291_v52, %v1948_v44  ;;  %v3084_v37 = vld [vmem:[%s3199_s28 + $0x1e8] sm:$0xff] }
  0xd1   : > { %v2335_v43 = vmax.f32 %v2191_v35, %v2239_v36  ;;  %v1475_v45 = vadd.f32 %v3268_v39, %v1474_v38  ;;  %v1595_v46 = vadd.f32 %v3268_v39, %v1594_v40  ;;  %v1237_v47 = vpop.f32.mrf.mxu0  ;;  %v1357_v49 = vpop.f32.mrf.mxu1  ;;  %v3108_v38 = vld [vmem:[%s3199_s28 + $0x2a8] sm:$0xff] }
  0xd2   : > { %v1238_v53 = vadd.f32 %v3268_v39, %v1237_v47  ;;  %v1358_v54 = vadd.f32 %v3268_v39, %v1357_v49  ;;  %v2288_v6 = vmax.f32 %v2096_v58, %v2144_v61 }
  0xd3   : > { %v2383_v55 = vmax.f32 %v2287_v34, %v2335_v43  ;;  %v1800_v56 = vmax.f32 %v1475_v45, 0.0  ;;  %v1848_v57 = vmax.f32 %v1595_v46, 0.0 }
  0xd4   : > { %v1705_v59 = vmax.f32 %v1238_v53, 0.0  ;;  %v1753_v60 = vmax.f32 %v1358_v54, 0.0  ;;  %2937 = vmatmul.msk.bf16.gmra.mxu0 %vm912_vm2, %v3035_v41  ;;  %2961 = vmatmul.msk.bf16.gmra.mxu1 %vm912_vm2, %v3059_v42 }
  0xd5   : > { %2432 = vst.msk [vmem:[%s3315_s14 + $0x30] sm:$0xff] %vm2425_vm3, %v2383_v55  ;;  %v1996_v62 = vmul.f32 %v3279_v48, %v1800_v56  ;;  %v2044_v63 = vmul.f32 %v3279_v48, %v1848_v57  ;;  %2985 = vmatmul.msk.bf16.gmra.mxu2 %vm912_vm2, %v3083_v50  ;;  %3009 = vmatmul.msk.bf16.gmra.mxu3 %vm912_vm2, %v3107_v51 }
  0xd6   : > { %v1901_v0 = vmul.f32 %v3279_v48, %v1705_v59  ;;  %v1949_v3 = vmul.f32 %v3279_v48, %v1753_v60 }
  0xd7   : > { %v2192_v1 = vadd.f32 %v3291_v52, %v1996_v62  ;;  %v2240_v2 = vadd.f32 %v3291_v52, %v2044_v63 }
  0xd8   : > { %v1477_v4 = vpop.f32.mrf.mxu2  ;;  %v1597_v5 = vpop.f32.mrf.mxu3  ;;  %v2097_v12 = vadd.f32 %v3291_v52, %v1901_v0  ;;  %v2145_v16 = vadd.f32 %v3291_v52, %v1949_v3 }
  0xd9   : > { %v2336_v7 = vmax.f32 %v2192_v1, %v2240_v2  ;;  %v1478_v8 = vadd.f32 %v3268_v39, %v1477_v4  ;;  %v1598_v9 = vadd.f32 %v3268_v39, %v1597_v5  ;;  %v1239_v10 = vpop.f32.mrf.mxu0  ;;  %v1359_v11 = vpop.f32.mrf.mxu1 }
  0xda   : > { %v1240_v13 = vadd.f32 %v3268_v39, %v1239_v10  ;;  %v1360_v14 = vadd.f32 %v3268_v39, %v1359_v11  ;;  %v2289_v23 = vmax.f32 %v2097_v12, %v2145_v16 }
  0xdb   : > { %v2384_v15 = vmax.f32 %v2288_v6, %v2336_v7  ;;  %v1801_v17 = vmax.f32 %v1478_v8, 0.0  ;;  %v1849_v18 = vmax.f32 %v1598_v9, 0.0 }
  0xdc   : > { %v1706_v19 = vmax.f32 %v1240_v13, 0.0  ;;  %v1754_v22 = vmax.f32 %v1360_v14, 0.0 }
  0xdd   : > { %2433 = vst.msk [vmem:[%s3315_s14 + $0x38] sm:$0xff] %vm2425_vm3, %v2384_v15  ;;  %v1997_v20 = vmul.f32 %v3279_v48, %v1801_v17  ;;  %v2045_v21 = vmul.f32 %v3279_v48, %v1849_v18  ;;  %v3037_v18 = vld [vmem:[%s3199_s28 + $0x70] sm:$0xff] }
  0xde   : > { %v1902_v26 = vmul.f32 %v3279_v48, %v1706_v19  ;;  %v1950_v32 = vmul.f32 %v3279_v48, %v1754_v22  ;;  %v3061_v19 = vld [vmem:[%s3199_s28 + $0x130] sm:$0xff] }
  0xdf   : > { %v2193_v24 = vadd.f32 %v3291_v52, %v1997_v20  ;;  %v2241_v25 = vadd.f32 %v3291_v52, %v2045_v21 }
  0xe0   : > { %v1479_v27 = vpop.f32.mrf.mxu2  ;;  %v1599_v28 = vpop.f32.mrf.mxu3  ;;  %v2098_v45 = vadd.f32 %v3291_v52, %v1902_v26  ;;  %v2146_v49 = vadd.f32 %v3291_v52, %v1950_v32  ;;  %v3085_v26 = vld [vmem:[%s3199_s28 + $0x1f0] sm:$0xff] }
  0xe1   : > { %v2337_v31 = vmax.f32 %v2193_v24, %v2241_v25  ;;  %v1480_v33 = vadd.f32 %v3268_v39, %v1479_v27  ;;  %v1600_v34 = vadd.f32 %v3268_v39, %v1599_v28  ;;  %v1242_v35 = vpop.f32.mrf.mxu0  ;;  %v1362_v36 = vpop.f32.mrf.mxu1  ;;  %v3109_v27 = vld [vmem:[%s3199_s28 + $0x2b0] sm:$0xff] }
  0xe2   : > { %v1243_v40 = vadd.f32 %v3268_v39, %v1242_v35  ;;  %v1363_v41 = vadd.f32 %v3268_v39, %v1362_v36  ;;  %v2290_v59 = vmax.f32 %v2098_v45, %v2146_v49 }
  0xe3   : > { %v2385_v42 = vmax.f32 %v2289_v23, %v2337_v31  ;;  %v1802_v43 = vmax.f32 %v1480_v33, 0.0  ;;  %v1850_v44 = vmax.f32 %v1600_v34, 0.0 }
  0xe4   : > { %v1707_v46 = vmax.f32 %v1243_v40, 0.0  ;;  %v1755_v47 = vmax.f32 %v1363_v41, 0.0  ;;  %2938 = vmatmul.msk.bf16.gmra.mxu0 %vm912_vm2, %v3036_v29  ;;  %2962 = vmatmul.msk.bf16.gmra.mxu1 %vm912_vm2, %v3060_v30 }
  0xe5   : > { %2434 = vst.msk [vmem:[%s3315_s14 + $0x40] sm:$0xff] %vm2425_vm3, %v2385_v42  ;;  %v1998_v50 = vmul.f32 %v3279_v48, %v1802_v43  ;;  %v2046_v51 = vmul.f32 %v3279_v48, %v1850_v44  ;;  %2986 = vmatmul.msk.bf16.gmra.mxu2 %vm912_vm2, %v3084_v37  ;;  %3010 = vmatmul.msk.bf16.gmra.mxu3 %vm912_vm2, %v3108_v38 }
  0xe6   : > { %v1903_v53 = vmul.f32 %v3279_v48, %v1707_v46  ;;  %v1951_v56 = vmul.f32 %v3279_v48, %v1755_v47 }
  0xe7   : > { %v2194_v54 = vadd.f32 %v3291_v52, %v1998_v50  ;;  %v2242_v55 = vadd.f32 %v3291_v52, %v2046_v51 }
  0xe8   : > { %v1482_v57 = vpop.f32.mrf.mxu2  ;;  %v1602_v58 = vpop.f32.mrf.mxu3  ;;  %v2099_v1 = vadd.f32 %v3291_v52, %v1903_v53  ;;  %v2147_v5 = vadd.f32 %v3291_v52, %v1951_v56 }
  0xe9   : > { %v2338_v60 = vmax.f32 %v2194_v54, %v2242_v55  ;;  %v1483_v61 = vadd.f32 %v3268_v39, %v1482_v57  ;;  %v1603_v62 = vadd.f32 %v3268_v39, %v1602_v58  ;;  %v1244_v63 = vpop.f32.mrf.mxu0  ;;  %v1364_v0 = vpop.f32.mrf.mxu1 }
  0xea   : > { %v1245_v2 = vadd.f32 %v3268_v39, %v1244_v63  ;;  %v1365_v3 = vadd.f32 %v3268_v39, %v1364_v0  ;;  %v2291_v12 = vmax.f32 %v2099_v1, %v2147_v5 }
  0xeb   : > { %v2386_v4 = vmax.f32 %v2290_v59, %v2338_v60  ;;  %v1803_v6 = vmax.f32 %v1483_v61, 0.0  ;;  %v1851_v7 = vmax.f32 %v1603_v62, 0.0 }
  0xec   : > { %v1708_v8 = vmax.f32 %v1245_v2, 0.0  ;;  %v1756_v11 = vmax.f32 %v1365_v3, 0.0 }
  0xed   : > { %2435 = vst.msk [vmem:[%s3315_s14 + $0x48] sm:$0xff] %vm2425_vm3, %v2386_v4  ;;  %v1999_v9 = vmul.f32 %v3279_v48, %v1803_v6  ;;  %v2047_v10 = vmul.f32 %v3279_v48, %v1851_v7  ;;  %v3038_v7 = vld [vmem:[%s3199_s28 + $0x78] sm:$0xff] }
  0xee   : > { %v1904_v15 = vmul.f32 %v3279_v48, %v1708_v8  ;;  %v1952_v21 = vmul.f32 %v3279_v48, %v1756_v11  ;;  %v3062_v8 = vld [vmem:[%s3199_s28 + $0x138] sm:$0xff] }
  0xef   : > { %v2195_v13 = vadd.f32 %v3291_v52, %v1999_v9  ;;  %v2243_v14 = vadd.f32 %v3291_v52, %v2047_v10 }
  0xf0   : > { %v1484_v16 = vpop.f32.mrf.mxu2  ;;  %v1604_v17 = vpop.f32.mrf.mxu3  ;;  %v2100_v33 = vadd.f32 %v3291_v52, %v1904_v15  ;;  %v2148_v36 = vadd.f32 %v3291_v52, %v1952_v21  ;;  %v3086_v15 = vld [vmem:[%s3199_s28 + $0x1f8] sm:$0xff] }
  0xf1   : > { %v2339_v20 = vmax.f32 %v2195_v13, %v2243_v14  ;;  %v1485_v22 = vadd.f32 %v3268_v39, %v1484_v16  ;;  %v1605_v23 = vadd.f32 %v3268_v39, %v1604_v17  ;;  %v1247_v24 = vpop.f32.mrf.mxu0  ;;  %v1367_v25 = vpop.f32.mrf.mxu1  ;;  %v3110_v16 = vld [vmem:[%s3199_s28 + $0x2b8] sm:$0xff] }
  0xf2   : > { %v1248_v28 = vadd.f32 %v3268_v39, %v1247_v24  ;;  %v1368_v29 = vadd.f32 %v3268_v39, %v1367_v25  ;;  %v2292_v46 = vmax.f32 %v2100_v33, %v2148_v36 }
  0xf3   : > { %v2387_v30 = vmax.f32 %v2291_v12, %v2339_v20  ;;  %v1804_v31 = vmax.f32 %v1485_v22, 0.0  ;;  %v1852_v32 = vmax.f32 %v1605_v23, 0.0 }
  0xf4   : > { %v1709_v34 = vmax.f32 %v1248_v28, 0.0  ;;  %v1757_v35 = vmax.f32 %v1368_v29, 0.0  ;;  %2939 = vmatmul.msk.bf16.gmra.mxu0 %vm912_vm2, %v3037_v18  ;;  %2963 = vmatmul.msk.bf16.gmra.mxu1 %vm912_vm2, %v3061_v19 }
  0xf5   : > { %2436 = vst.msk [vmem:[%s3315_s14 + $0x50] sm:$0xff] %vm2425_vm3, %v2387_v30  ;;  %v2000_v37 = vmul.f32 %v3279_v48, %v1804_v31  ;;  %v2048_v38 = vmul.f32 %v3279_v48, %v1852_v32  ;;  %2987 = vmatmul.msk.bf16.gmra.mxu2 %vm912_vm2, %v3085_v26  ;;  %3011 = vmatmul.msk.bf16.gmra.mxu3 %vm912_vm2, %v3109_v27 }
  0xf6   : > { %v1905_v40 = vmul.f32 %v3279_v48, %v1709_v34  ;;  %v1953_v43 = vmul.f32 %v3279_v48, %v1757_v35 }
  0xf7   : > { %v2196_v41 = vadd.f32 %v3291_v52, %v2000_v37  ;;  %v2244_v42 = vadd.f32 %v3291_v52, %v2048_v38 }
  0xf8   : > { %v1487_v44 = vpop.f32.mrf.mxu2  ;;  %v1607_v45 = vpop.f32.mrf.mxu3  ;;  %v2101_v54 = vadd.f32 %v3291_v52, %v1905_v40  ;;  %v2149_v58 = vadd.f32 %v3291_v52, %v1953_v43 }
  0xf9   : > { %v2340_v47 = vmax.f32 %v2196_v41, %v2244_v42  ;;  %v1488_v49 = vadd.f32 %v3268_v39, %v1487_v44  ;;  %v1608_v50 = vadd.f32 %v3268_v39, %v1607_v45  ;;  %v1249_v51 = vpop.f32.mrf.mxu0  ;;  %v1369_v53 = vpop.f32.mrf.mxu1 }
  0xfa   : > { %v1250_v55 = vadd.f32 %v3268_v39, %v1249_v51  ;;  %v1370_v56 = vadd.f32 %v3268_v39, %v1369_v53  ;;  %v2293_v1 = vmax.f32 %v2101_v54, %v2149_v58 }
  0xfb   : > { %v2388_v57 = vmax.f32 %v2292_v46, %v2340_v47  ;;  %v1805_v59 = vmax.f32 %v1488_v49, 0.0  ;;  %v1853_v60 = vmax.f32 %v1608_v50, 0.0 }
  0xfc   : > { %v1710_v61 = vmax.f32 %v1250_v55, 0.0  ;;  %v1758_v0 = vmax.f32 %v1370_v56, 0.0 }
  0xfd   : > { %2437 = vst.msk [vmem:[%s3315_s14 + $0x58] sm:$0xff] %vm2425_vm3, %v2388_v57  ;;  %v2001_v62 = vmul.f32 %v3279_v48, %v1805_v59  ;;  %v2049_v63 = vmul.f32 %v3279_v48, %v1853_v60  ;;  %v3039_v60 = vld [vmem:[%s3199_s28 + $0x80] sm:$0xff] }
  0xfe   : > { %v1906_v4 = vmul.f32 %v3279_v48, %v1710_v61  ;;  %v1954_v10 = vmul.f32 %v3279_v48, %v1758_v0  ;;  %v3063_v61 = vld [vmem:[%s3199_s28 + $0x140] sm:$0xff] }
  0xff   : > { %v2197_v2 = vadd.f32 %v3291_v52, %v2001_v62  ;;  %v2245_v3 = vadd.f32 %v3291_v52, %v2049_v63 }
 0x100   : > { %v1489_v5 = vpop.f32.mrf.mxu2  ;;  %v1609_v6 = vpop.f32.mrf.mxu3  ;;  %v2102_v22 = vadd.f32 %v3291_v52, %v1906_v4  ;;  %v2150_v25 = vadd.f32 %v3291_v52, %v1954_v10  ;;  %v3087_v4 = vld [vmem:[%s3199_s28 + $0x200] sm:$0xff] }
 0x101   : > { %v2341_v9 = vmax.f32 %v2197_v2, %v2245_v3  ;;  %v1490_v11 = vadd.f32 %v3268_v39, %v1489_v5  ;;  %v1610_v12 = vadd.f32 %v3268_v39, %v1609_v6  ;;  %v1252_v13 = vpop.f32.mrf.mxu0  ;;  %v1372_v14 = vpop.f32.mrf.mxu1  ;;  %v3111_v5 = vld [vmem:[%s3199_s28 + $0x2c0] sm:$0xff] }
 0x102   : > { %v1253_v17 = vadd.f32 %v3268_v39, %v1252_v13  ;;  %v1373_v18 = vadd.f32 %v3268_v39, %v1372_v14  ;;  %v2294_v34 = vmax.f32 %v2102_v22, %v2150_v25 }
 0x103   : > { %v2389_v19 = vmax.f32 %v2293_v1, %v2341_v9  ;;  %v1806_v20 = vmax.f32 %v1490_v11, 0.0  ;;  %v1854_v21 = vmax.f32 %v1610_v12, 0.0 }
 0x104   : > { %v1711_v23 = vmax.f32 %v1253_v17, 0.0  ;;  %v1759_v24 = vmax.f32 %v1373_v18, 0.0  ;;  %2940 = vmatmul.msk.bf16.gmra.mxu0 %vm912_vm2, %v3038_v7  ;;  %2964 = vmatmul.msk.bf16.gmra.mxu1 %vm912_vm2, %v3062_v8 }
 0x105   : > { %2438 = vst.msk [vmem:[%s3315_s14 + $0x60] sm:$0xff] %vm2425_vm3, %v2389_v19  ;;  %v2002_v26 = vmul.f32 %v3279_v48, %v1806_v20  ;;  %v2050_v27 = vmul.f32 %v3279_v48, %v1854_v21  ;;  %2988 = vmatmul.msk.bf16.gmra.mxu2 %vm912_vm2, %v3086_v15  ;;  %3012 = vmatmul.msk.bf16.gmra.mxu3 %vm912_vm2, %v3110_v16 }
 0x106   : > { %v1907_v28 = vmul.f32 %v3279_v48, %v1711_v23  ;;  %v1955_v31 = vmul.f32 %v3279_v48, %v1759_v24 }
 0x107   : > { %v2198_v29 = vadd.f32 %v3291_v52, %v2002_v26  ;;  %v2246_v30 = vadd.f32 %v3291_v52, %v2050_v27 }
 0x108   : > { %v1492_v32 = vpop.f32.mrf.mxu2  ;;  %v1612_v33 = vpop.f32.mrf.mxu3  ;;  %v2103_v41 = vadd.f32 %v3291_v52, %v1907_v28  ;;  %v2151_v45 = vadd.f32 %v3291_v52, %v1955_v31 }
 0x109   : > { %v2342_v35 = vmax.f32 %v2198_v29, %v2246_v30  ;;  %v1493_v36 = vadd.f32 %v3268_v39, %v1492_v32  ;;  %v1613_v37 = vadd.f32 %v3268_v39, %v1612_v33  ;;  %v1254_v38 = vpop.f32.mrf.mxu0  ;;  %v1374_v40 = vpop.f32.mrf.mxu1 }
 0x10a   : > { %v1255_v42 = vadd.f32 %v3268_v39, %v1254_v38  ;;  %v1375_v43 = vadd.f32 %v3268_v39, %v1374_v40  ;;  %v2295_v54 = vmax.f32 %v2103_v41, %v2151_v45 }
 0x10b   : > { %v2390_v44 = vmax.f32 %v2294_v34, %v2342_v35  ;;  %v1807_v46 = vmax.f32 %v1493_v36, 0.0  ;;  %v1855_v47 = vmax.f32 %v1613_v37, 0.0 }
 0x10c   : > { %v1712_v49 = vmax.f32 %v1255_v42, 0.0  ;;  %v1760_v53 = vmax.f32 %v1375_v43, 0.0 }
 0x10d   : > { %2439 = vst.msk [vmem:[%s3315_s14 + $0x68] sm:$0xff] %vm2425_vm3, %v2390_v44  ;;  %v2003_v50 = vmul.f32 %v3279_v48, %v1807_v46  ;;  %v2051_v51 = vmul.f32 %v3279_v48, %v1855_v47  ;;  %v3040_v47 = vld [vmem:[%s3199_s28 + $0x88] sm:$0xff] }
 0x10e   : > { %v1908_v57 = vmul.f32 %v3279_v48, %v1712_v49  ;;  %v1956_v63 = vmul.f32 %v3279_v48, %v1760_v53  ;;  %v3064_v49 = vld [vmem:[%s3199_s28 + $0x148] sm:$0xff] }
 0x10f   : > { %v2199_v55 = vadd.f32 %v3291_v52, %v2003_v50  ;;  %v2247_v56 = vadd.f32 %v3291_v52, %v2051_v51 }
 0x110   : > { %v1494_v58 = vpop.f32.mrf.mxu2  ;;  %v1614_v59 = vpop.f32.mrf.mxu3  ;;  %v2104_v11 = vadd.f32 %v3291_v52, %v1908_v57  ;;  %v2152_v14 = vadd.f32 %v3291_v52, %v1956_v63  ;;  %v3088_v57 = vld [vmem:[%s3199_s28 + $0x208] sm:$0xff] }
 0x111   : > { %v2343_v62 = vmax.f32 %v2199_v55, %v2247_v56  ;;  %v1495_v0 = vadd.f32 %v3268_v39, %v1494_v58  ;;  %v1615_v1 = vadd.f32 %v3268_v39, %v1614_v59  ;;  %v1257_v2 = vpop.f32.mrf.mxu0  ;;  %v1377_v3 = vpop.f32.mrf.mxu1  ;;  %v3112_v58 = vld [vmem:[%s3199_s28 + $0x2c8] sm:$0xff] }
 0x112   : > { %v1258_v6 = vadd.f32 %v3268_v39, %v1257_v2  ;;  %v1378_v7 = vadd.f32 %v3268_v39, %v1377_v3  ;;  %v2296_v23 = vmax.f32 %v2104_v11, %v2152_v14 }
 0x113   : > { %v2391_v8 = vmax.f32 %v2295_v54, %v2343_v62  ;;  %v1808_v9 = vmax.f32 %v1495_v0, 0.0  ;;  %v1856_v10 = vmax.f32 %v1615_v1, 0.0 }
 0x114   : > { %v1713_v12 = vmax.f32 %v1258_v6, 0.0  ;;  %v1761_v13 = vmax.f32 %v1378_v7, 0.0  ;;  %2941 = vmatmul.msk.bf16.gmra.mxu0 %vm912_vm2, %v3039_v60  ;;  %2965 = vmatmul.msk.bf16.gmra.mxu1 %vm912_vm2, %v3063_v61 }
 0x115   : > { %2440 = vst.msk [vmem:[%s3315_s14 + $0x70] sm:$0xff] %vm2425_vm3, %v2391_v8  ;;  %v2004_v15 = vmul.f32 %v3279_v48, %v1808_v9  ;;  %v2052_v16 = vmul.f32 %v3279_v48, %v1856_v10  ;;  %2989 = vmatmul.msk.bf16.gmra.mxu2 %vm912_vm2, %v3087_v4  ;;  %3013 = vmatmul.msk.bf16.gmra.mxu3 %vm912_vm2, %v3111_v5 }
 0x116   : > { %v1909_v17 = vmul.f32 %v3279_v48, %v1713_v12  ;;  %v1957_v20 = vmul.f32 %v3279_v48, %v1761_v13  ;;  %v3629_v13 = vld [vmem:[%s4122_s2] ss:$0 sm:$0xff] }
 0x117   : > { %v2200_v18 = vadd.f32 %v3291_v52, %v2004_v15  ;;  %v2248_v19 = vadd.f32 %v3291_v52, %v2052_v16 }
 0x118   : > { %v1497_v21 = vpop.f32.mrf.mxu2  ;;  %v1617_v22 = vpop.f32.mrf.mxu3  ;;  %v2105_v29 = vadd.f32 %v3291_v52, %v1909_v17  ;;  %v2153_v33 = vadd.f32 %v3291_v52, %v1957_v20 }
 0x119   : > { %v2344_v24 = vmax.f32 %v2200_v18, %v2248_v19  ;;  %v1498_v25 = vadd.f32 %v3268_v39, %v1497_v21  ;;  %v1618_v26 = vadd.f32 %v3268_v39, %v1617_v22  ;;  %v1259_v27 = vpop.f32.mrf.mxu0  ;;  %v1379_v28 = vpop.f32.mrf.mxu1 }
 0x11a   : > { %v1260_v30 = vadd.f32 %v3268_v39, %v1259_v27  ;;  %v1380_v31 = vadd.f32 %v3268_v39, %v1379_v28  ;;  %v2297_v41 = vmax.f32 %v2105_v29, %v2153_v33 }
 0x11b   : > { %v2392_v32 = vmax.f32 %v2296_v23, %v2344_v24  ;;  %v1809_v34 = vmax.f32 %v1498_v25, 0.0  ;;  %v1857_v35 = vmax.f32 %v1618_v26, 0.0 }
 0x11c   : > { %v1714_v36 = vmax.f32 %v1260_v30, 0.0  ;;  %v1762_v40 = vmax.f32 %v1380_v31, 0.0 }
 0x11d   : > { %2441 = vst.msk [vmem:[%s3315_s14 + $0x78] sm:$0xff] %vm2425_vm3, %v2392_v32  ;;  %v2005_v37 = vmul.f32 %v3279_v48, %v1809_v34  ;;  %v2053_v38 = vmul.f32 %v3279_v48, %v1857_v35  ;;  %v3041_v35 = vld [vmem:[%s3199_s28 + $0x90] sm:$0xff] }
 0x11e   : > { %v1910_v44 = vmul.f32 %v3279_v48, %v1714_v36  ;;  %v1958_v51 = vmul.f32 %v3279_v48, %v1762_v40  ;;  %v3065_v36 = vld [vmem:[%s3199_s28 + $0x150] sm:$0xff] }
 0x11f   : > { %v2201_v42 = vadd.f32 %v3291_v52, %v2005_v37  ;;  %v2249_v43 = vadd.f32 %v3291_v52, %v2053_v38 }
 0x120   : > { %v1499_v45 = vpop.f32.mrf.mxu2  ;;  %v1619_v46 = vpop.f32.mrf.mxu3  ;;  %v2106_v0 = vadd.f32 %v3291_v52, %v1910_v44  ;;  %v2154_v3 = vadd.f32 %v3291_v52, %v1958_v51  ;;  %v3089_v44 = vld [vmem:[%s3199_s28 + $0x210] sm:$0xff] }
 0x121   : > { %v2345_v50 = vmax.f32 %v2201_v42, %v2249_v43  ;;  %v1500_v53 = vadd.f32 %v3268_v39, %v1499_v45  ;;  %v1620_v54 = vadd.f32 %v3268_v39, %v1619_v46  ;;  %v1262_v55 = vpop.f32.mrf.mxu0  ;;  %v1382_v56 = vpop.f32.mrf.mxu1  ;;  %v3113_v45 = vld [vmem:[%s3199_s28 + $0x2d0] sm:$0xff] }
 0x122   : > { %v1263_v59 = vadd.f32 %v3268_v39, %v1262_v55  ;;  %v1383_v60 = vadd.f32 %v3268_v39, %v1382_v56  ;;  %v3620_v39 = vld [vmem:[%s4123_s3] ss:$0 sm:$0xff] }
 0x123   : > { %v2393_v61 = vmax.f32 %v2297_v41, %v2345_v50  ;;  %v1810_v62 = vmax.f32 %v1500_v53, 0.0  ;;  %v1858_v63 = vmax.f32 %v1620_v54, 0.0 }
 0x124   : > { %v1715_v1 = vmax.f32 %v1263_v59, 0.0  ;;  %v1763_v2 = vmax.f32 %v1383_v60, 0.0  ;;  %2942 = vmatmul.msk.bf16.gmra.mxu0 %vm912_vm2, %v3040_v47  ;;  %2966 = vmatmul.msk.bf16.gmra.mxu1 %vm912_vm2, %v3064_v49 }
 0x125   : > { %2442 = vst.msk [vmem:[%s3315_s14 + $0x80] sm:$0xff] %vm2425_vm3, %v2393_v61  ;;  %v2006_v4 = vmul.f32 %v3279_v48, %v1810_v62  ;;  %v2054_v5 = vmul.f32 %v3279_v48, %v1858_v63  ;;  %2990 = vmatmul.msk.bf16.gmra.mxu2 %vm912_vm2, %v3088_v57  ;;  %3014 = vmatmul.msk.bf16.gmra.mxu3 %vm912_vm2, %v3112_v58 }
 0x126   : > { %v1911_v6 = vmul.f32 %v3620_v39, %v1715_v1  ;;  %v1959_v9 = vmul.f32 %v3620_v39, %v1763_v2  ;;  %v2298_v48 = vmax.f32 %v2106_v0, %v2154_v3 }
 0x127   : > { %v2202_v7 = vadd.f32 %v3291_v52, %v2006_v4  ;;  %v2250_v8 = vadd.f32 %v3291_v52, %v2054_v5  ;;  %v3636_v52 = vld [vmem:[%s4124_s4] ss:$0 sm:$0xff] }
 0x128   : > { %v1502_v10 = vpop.f32.mrf.mxu2  ;;  %v1622_v11 = vpop.f32.mrf.mxu3  ;;  %v2107_v18 = vadd.f32 %v3636_v52, %v1911_v6  ;;  %v2155_v22 = vadd.f32 %v3636_v52, %v1959_v9 }
 0x129   : > { %v2346_v12 = vmax.f32 %v2202_v7, %v2250_v8  ;;  %v1503_v14 = vadd.f32 %v3629_v13, %v1502_v10  ;;  %v1623_v15 = vadd.f32 %v3629_v13, %v1622_v11  ;;  %v1264_v16 = vpop.f32.mrf.mxu0  ;;  %v1384_v17 = vpop.f32.mrf.mxu1 }
 0x12a   : > { %v1265_v19 = vadd.f32 %v3629_v13, %v1264_v16  ;;  %v1385_v20 = vadd.f32 %v3629_v13, %v1384_v17  ;;  %v2299_v29 = vmax.f32 %v2107_v18, %v2155_v22 }
 0x12b   : > { %v2394_v21 = vmax.f32 %v2298_v48, %v2346_v12  ;;  %v1811_v23 = vmax.f32 %v1503_v14, 0.0  ;;  %v1859_v24 = vmax.f32 %v1623_v15, 0.0 }
 0x12c   : > { %v1716_v25 = vmax.f32 %v1265_v19, 0.0  ;;  %v1764_v28 = vmax.f32 %v1385_v20, 0.0 }
 0x12d   : > { %2443 = vst.msk [vmem:[%s3315_s14 + $0x88] sm:$0xff] %vm2425_vm3, %v2394_v21  ;;  %v2007_v26 = vmul.f32 %v3620_v39, %v1811_v23  ;;  %v2055_v27 = vmul.f32 %v3620_v39, %v1859_v24  ;;  %v3042_v24 = vld [vmem:[%s3199_s28 + $0x98] sm:$0xff] }
 0x12e   : > { %v1912_v32 = vmul.f32 %v3620_v39, %v1716_v25  ;;  %v1960_v38 = vmul.f32 %v3620_v39, %v1764_v28  ;;  %v3066_v25 = vld [vmem:[%s3199_s28 + $0x158] sm:$0xff] }
 0x12f   : > { %v2203_v30 = vadd.f32 %v3636_v52, %v2007_v26  ;;  %v2251_v31 = vadd.f32 %v3636_v52, %v2055_v27 }
 0x130   : > { %v1504_v33 = vpop.f32.mrf.mxu2  ;;  %v1624_v34 = vpop.f32.mrf.mxu3  ;;  %v2108_v53 = vadd.f32 %v3636_v52, %v1912_v32  ;;  %v2156_v56 = vadd.f32 %v3636_v52, %v1960_v38  ;;  %v3090_v32 = vld [vmem:[%s3199_s28 + $0x218] sm:$0xff] }
 0x131   : > { %v2347_v37 = vmax.f32 %v2203_v30, %v2251_v31  ;;  %v1505_v40 = vadd.f32 %v3629_v13, %v1504_v33  ;;  %v1625_v41 = vadd.f32 %v3629_v13, %v1624_v34  ;;  %v1267_v42 = vpop.f32.mrf.mxu0  ;;  %v1387_v43 = vpop.f32.mrf.mxu1  ;;  %v3114_v33 = vld [vmem:[%s3199_s28 + $0x2d8] sm:$0xff] }
 0x132   : > { %v1268_v46 = vadd.f32 %v3629_v13, %v1267_v42  ;;  %v1388_v47 = vadd.f32 %v3629_v13, %v1387_v43  ;;  %v2300_v1 = vmax.f32 %v2108_v53, %v2156_v56 }
 0x133   : > { %v2395_v49 = vmax.f32 %v2299_v29, %v2347_v37  ;;  %v1812_v50 = vmax.f32 %v1505_v40, 0.0  ;;  %v1860_v51 = vmax.f32 %v1625_v41, 0.0 }
 0x134   : > { %v1717_v54 = vmax.f32 %v1268_v46, 0.0  ;;  %v1765_v55 = vmax.f32 %v1388_v47, 0.0  ;;  %2943 = vmatmul.msk.bf16.gmra.mxu0 %vm912_vm2, %v3041_v35  ;;  %2967 = vmatmul.msk.bf16.gmra.mxu1 %vm912_vm2, %v3065_v36 }
 0x135   : > { %2444 = vst.msk [vmem:[%s3315_s14 + $0x90] sm:$0xff] %vm2425_vm3, %v2395_v49  ;;  %v2008_v57 = vmul.f32 %v3620_v39, %v1812_v50  ;;  %v2056_v58 = vmul.f32 %v3620_v39, %v1860_v51  ;;  %2991 = vmatmul.msk.bf16.gmra.mxu2 %vm912_vm2, %v3089_v44  ;;  %3015 = vmatmul.msk.bf16.gmra.mxu3 %vm912_vm2, %v3113_v45 }
 0x136   : > { %v1913_v59 = vmul.f32 %v3620_v39, %v1717_v54  ;;  %v1961_v62 = vmul.f32 %v3620_v39, %v1765_v55 }
 0x137   : > { %v2204_v60 = vadd.f32 %v3636_v52, %v2008_v57  ;;  %v2252_v61 = vadd.f32 %v3636_v52, %v2056_v58 }
 0x138   : > { %v1507_v63 = vpop.f32.mrf.mxu2  ;;  %v1627_v0 = vpop.f32.mrf.mxu3  ;;  %v2109_v7 = vadd.f32 %v3636_v52, %v1913_v59  ;;  %v2157_v11 = vadd.f32 %v3636_v52, %v1961_v62 }
 0x139   : > { %v2348_v2 = vmax.f32 %v2204_v60, %v2252_v61  ;;  %v1508_v3 = vadd.f32 %v3629_v13, %v1507_v63  ;;  %v1628_v4 = vadd.f32 %v3629_v13, %v1627_v0  ;;  %v1269_v5 = vpop.f32.mrf.mxu0  ;;  %v1389_v6 = vpop.f32.mrf.mxu1 }
 0x13a   : > { %v1270_v8 = vadd.f32 %v3629_v13, %v1269_v5  ;;  %v1390_v9 = vadd.f32 %v3629_v13, %v1389_v6  ;;  %v2301_v18 = vmax.f32 %v2109_v7, %v2157_v11 }
 0x13b   : > { %v2396_v10 = vmax.f32 %v2300_v1, %v2348_v2  ;;  %v1813_v48 = vmax.f32 %v1508_v3, 0.0  ;;  %v1861_v12 = vmax.f32 %v1628_v4, 0.0 }
 0x13c   : > { %v1718_v14 = vmax.f32 %v1270_v8, 0.0  ;;  %v1766_v17 = vmax.f32 %v1390_v9, 0.0 }
 0x13d   : > { %2445 = vst.msk [vmem:[%s3315_s14 + $0x98] sm:$0xff] %vm2425_vm3, %v2396_v10  ;;  %v2009_v15 = vmul.f32 %v3620_v39, %v1813_v48  ;;  %v2057_v16 = vmul.f32 %v3620_v39, %v1861_v12  ;;  %v3043_v12 = vld [vmem:[%s3199_s28 + $0xa0] sm:$0xff] }
 0x13e   : > { %v1914_v21 = vmul.f32 %v3620_v39, %v1718_v14  ;;  %v1962_v27 = vmul.f32 %v3620_v39, %v1766_v17  ;;  %v3067_v14 = vld [vmem:[%s3199_s28 + $0x160] sm:$0xff] }
 0x13f   : > { %v2205_v19 = vadd.f32 %v3636_v52, %v2009_v15  ;;  %v2253_v20 = vadd.f32 %v3636_v52, %v2057_v16 }
 0x140   : > { %v1509_v22 = vpop.f32.mrf.mxu2  ;;  %v1629_v23 = vpop.f32.mrf.mxu3  ;;  %v2110_v40 = vadd.f32 %v3636_v52, %v1914_v21  ;;  %v2158_v43 = vadd.f32 %v3636_v52, %v1962_v27  ;;  %v3091_v21 = vld [vmem:[%s3199_s28 + $0x220] sm:$0xff] }
 0x141   : > { %v2349_v26 = vmax.f32 %v2205_v19, %v2253_v20  ;;  %v1510_v28 = vadd.f32 %v3629_v13, %v1509_v22  ;;  %v1630_v29 = vadd.f32 %v3629_v13, %v1629_v23  ;;  %v1272_v30 = vpop.f32.mrf.mxu0  ;;  %v1392_v31 = vpop.f32.mrf.mxu1  ;;  %v3115_v22 = vld [vmem:[%s3199_s28 + $0x2e0] sm:$0xff] }
 0x142   : > { %v1273_v34 = vadd.f32 %v3629_v13, %v1272_v30  ;;  %v1393_v35 = vadd.f32 %v3629_v13, %v1392_v31  ;;  %v2302_v54 = vmax.f32 %v2110_v40, %v2158_v43 }
 0x143   : > { %v2397_v36 = vmax.f32 %v2301_v18, %v2349_v26  ;;  %v1814_v37 = vmax.f32 %v1510_v28, 0.0  ;;  %v1862_v38 = vmax.f32 %v1630_v29, 0.0 }
 0x144   : > { %v1719_v41 = vmax.f32 %v1273_v34, 0.0  ;;  %v1767_v42 = vmax.f32 %v1393_v35, 0.0  ;;  %2944 = vmatmul.msk.bf16.gmra.mxu0 %vm912_vm2, %v3042_v24  ;;  %2968 = vmatmul.msk.bf16.gmra.mxu1 %vm912_vm2, %v3066_v25 }
 0x145   : > { %2446 = vst.msk [vmem:[%s3315_s14 + $0xa0] sm:$0xff] %vm2425_vm3, %v2397_v36  ;;  %v2010_v44 = vmul.f32 %v3620_v39, %v1814_v37  ;;  %v2058_v45 = vmul.f32 %v3620_v39, %v1862_v38  ;;  %2992 = vmatmul.msk.bf16.gmra.mxu2 %vm912_vm2, %v3090_v32  ;;  %3016 = vmatmul.msk.bf16.gmra.mxu3 %vm912_vm2, %v3114_v33 }
 0x146   : > { %v1915_v46 = vmul.f32 %v3620_v39, %v1719_v41  ;;  %v1963_v50 = vmul.f32 %v3620_v39, %v1767_v42 }
 0x147   : > { %v2206_v47 = vadd.f32 %v3636_v52, %v2010_v44  ;;  %v2254_v49 = vadd.f32 %v3636_v52, %v2058_v45 }
 0x148   : > { %v1512_v51 = vpop.f32.mrf.mxu2  ;;  %v1632_v53 = vpop.f32.mrf.mxu3  ;;  %v2111_v60 = vadd.f32 %v3636_v52, %v1915_v46  ;;  %v2159_v0 = vadd.f32 %v3636_v52, %v1963_v50 }
 0x149   : > { %v2350_v55 = vmax.f32 %v2206_v47, %v2254_v49  ;;  %v1513_v56 = vadd.f32 %v3629_v13, %v1512_v51  ;;  %v1633_v57 = vadd.f32 %v3629_v13, %v1632_v53  ;;  %v1274_v58 = vpop.f32.mrf.mxu0  ;;  %v1394_v59 = vpop.f32.mrf.mxu1 }
 0x14a   : > { %v1275_v61 = vadd.f32 %v3629_v13, %v1274_v58  ;;  %v1395_v62 = vadd.f32 %v3629_v13, %v1394_v59  ;;  %v2303_v7 = vmax.f32 %v2111_v60, %v2159_v0 }
 0x14b   : > { %v2398_v63 = vmax.f32 %v2302_v54, %v2350_v55  ;;  %v1815_v1 = vmax.f32 %v1513_v56, 0.0  ;;  %v1863_v2 = vmax.f32 %v1633_v57, 0.0 }
 0x14c   : > { %v1720_v3 = vmax.f32 %v1275_v61, 0.0  ;;  %v1768_v6 = vmax.f32 %v1395_v62, 0.0 }
 0x14d   : > { %2447 = vst.msk [vmem:[%s3315_s14 + $0xa8] sm:$0xff] %vm2425_vm3, %v2398_v63  ;;  %v2011_v4 = vmul.f32 %v3620_v39, %v1815_v1  ;;  %v2059_v5 = vmul.f32 %v3620_v39, %v1863_v2  ;;  %v3044_v2 = vld [vmem:[%s3199_s28 + $0xa8] sm:$0xff] }
 0x14e   : > { %v1916_v10 = vmul.f32 %v3620_v39, %v1720_v3  ;;  %v1964_v16 = vmul.f32 %v3620_v39, %v1768_v6  ;;  %v3068_v3 = vld [vmem:[%s3199_s28 + $0x168] sm:$0xff] }
 0x14f   : > { %v2207_v8 = vadd.f32 %v3636_v52, %v2011_v4  ;;  %v2255_v9 = vadd.f32 %v3636_v52, %v2059_v5 }
 0x150   : > { %v1514_v11 = vpop.f32.mrf.mxu2  ;;  %v1634_v48 = vpop.f32.mrf.mxu3  ;;  %v2112_v28 = vadd.f32 %v3636_v52, %v1916_v10  ;;  %v2160_v31 = vadd.f32 %v3636_v52, %v1964_v16  ;;  %v3092_v10 = vld [vmem:[%s3199_s28 + $0x228] sm:$0xff] }
 0x151   : > { %v2351_v15 = vmax.f32 %v2207_v8, %v2255_v9  ;;  %v1515_v17 = vadd.f32 %v3629_v13, %v1514_v11  ;;  %v1635_v18 = vadd.f32 %v3629_v13, %v1634_v48  ;;  %v1277_v19 = vpop.f32.mrf.mxu0  ;;  %v1397_v20 = vpop.f32.mrf.mxu1  ;;  %v3116_v11 = vld [vmem:[%s3199_s28 + $0x2e8] sm:$0xff] }
 0x152   : > { %v1278_v23 = vadd.f32 %v3629_v13, %v1277_v19  ;;  %v1398_v24 = vadd.f32 %v3629_v13, %v1397_v20  ;;  %v2304_v41 = vmax.f32 %v2112_v28, %v2160_v31 }
 0x153   : > { %v2399_v25 = vmax.f32 %v2303_v7, %v2351_v15  ;;  %v1816_v26 = vmax.f32 %v1515_v17, 0.0  ;;  %v1864_v27 = vmax.f32 %v1635_v18, 0.0 }
 0x154   : > { %v1721_v29 = vmax.f32 %v1278_v23, 0.0  ;;  %v1769_v30 = vmax.f32 %v1398_v24, 0.0  ;;  %2945 = vmatmul.msk.bf16.gmra.mxu0 %vm912_vm2, %v3043_v12  ;;  %2969 = vmatmul.msk.bf16.gmra.mxu1 %vm912_vm2, %v3067_v14 }
 0x155   : > { %2448 = vst.msk [vmem:[%s3315_s14 + $0xb0] sm:$0xff] %vm2425_vm3, %v2399_v25  ;;  %v2012_v32 = vmul.f32 %v3620_v39, %v1816_v26  ;;  %v2060_v33 = vmul.f32 %v3620_v39, %v1864_v27  ;;  %2993 = vmatmul.msk.bf16.gmra.mxu2 %vm912_vm2, %v3091_v21  ;;  %3017 = vmatmul.msk.bf16.gmra.mxu3 %vm912_vm2, %v3115_v22 }
 0x156   : > { %v1917_v34 = vmul.f32 %v3620_v39, %v1721_v29  ;;  %v1965_v37 = vmul.f32 %v3620_v39, %v1769_v30 }
 0x157   : > { %v2208_v35 = vadd.f32 %v3636_v52, %v2012_v32  ;;  %v2256_v36 = vadd.f32 %v3636_v52, %v2060_v33 }
 0x158   : > { %v1517_v38 = vpop.f32.mrf.mxu2  ;;  %v1637_v40 = vpop.f32.mrf.mxu3  ;;  %v2113_v47 = vadd.f32 %v3636_v52, %v1917_v34  ;;  %v2161_v53 = vadd.f32 %v3636_v52, %v1965_v37 }
 0x159   : > { %v2352_v42 = vmax.f32 %v2208_v35, %v2256_v36  ;;  %v1518_v43 = vadd.f32 %v3629_v13, %v1517_v38  ;;  %v1638_v44 = vadd.f32 %v3629_v13, %v1637_v40  ;;  %v1279_v45 = vpop.f32.mrf.mxu0  ;;  %v1399_v46 = vpop.f32.mrf.mxu1 }
 0x15a   : > { %v1280_v49 = vadd.f32 %v3629_v13, %v1279_v45  ;;  %v1400_v50 = vadd.f32 %v3629_v13, %v1399_v46  ;;  %v2305_v60 = vmax.f32 %v2113_v47, %v2161_v53 }
 0x15b   : > { %v2400_v51 = vmax.f32 %v2304_v41, %v2352_v42  ;;  %v1817_v54 = vmax.f32 %v1518_v43, 0.0  ;;  %v1865_v55 = vmax.f32 %v1638_v44, 0.0 }
 0x15c   : > { %v1722_v56 = vmax.f32 %v1280_v49, 0.0  ;;  %v1770_v59 = vmax.f32 %v1400_v50, 0.0 }
 0x15d   : > { %2449 = vst.msk [vmem:[%s3315_s14 + $0xb8] sm:$0xff] %vm2425_vm3, %v2400_v51  ;;  %v2013_v57 = vmul.f32 %v3620_v39, %v1817_v54  ;;  %v2061_v58 = vmul.f32 %v3620_v39, %v1865_v55  ;;  %v3045_v55 = vld [vmem:[%s3199_s28 + $0xb0] sm:$0xff] }
 0x15e   : > { %v1918_v63 = vmul.f32 %v3620_v39, %v1722_v56  ;;  %v1966_v5 = vmul.f32 %v3620_v39, %v1770_v59  ;;  %v3069_v56 = vld [vmem:[%s3199_s28 + $0x170] sm:$0xff] }
 0x15f   : > { %v2209_v61 = vadd.f32 %v3636_v52, %v2013_v57  ;;  %v2257_v62 = vadd.f32 %v3636_v52, %v2061_v58 }
 0x160   : > { %v1519_v0 = vpop.f32.mrf.mxu2  ;;  %v1639_v1 = vpop.f32.mrf.mxu3  ;;  %v2114_v17 = vadd.f32 %v3636_v52, %v1918_v63  ;;  %v2162_v20 = vadd.f32 %v3636_v52, %v1966_v5  ;;  %v3093_v63 = vld [vmem:[%s3199_s28 + $0x230] sm:$0xff] }
 0x161   : > { %v2353_v4 = vmax.f32 %v2209_v61, %v2257_v62  ;;  %v1520_v6 = vadd.f32 %v3629_v13, %v1519_v0  ;;  %v1640_v7 = vadd.f32 %v3629_v13, %v1639_v1  ;;  %v1282_v8 = vpop.f32.mrf.mxu0  ;;  %v1402_v9 = vpop.f32.mrf.mxu1  ;;  %v3117_v0 = vld [vmem:[%s3199_s28 + $0x2f0] sm:$0xff] }
 0x162   : > { %v1283_v48 = vadd.f32 %v3629_v13, %v1282_v8  ;;  %v1403_v12 = vadd.f32 %v3629_v13, %v1402_v9  ;;  %v2306_v29 = vmax.f32 %v2114_v17, %v2162_v20 }
 0x163   : > { %v2401_v14 = vmax.f32 %v2305_v60, %v2353_v4  ;;  %v1818_v15 = vmax.f32 %v1520_v6, 0.0  ;;  %v1866_v16 = vmax.f32 %v1640_v7, 0.0 }
 0x164   : > { %v1723_v18 = vmax.f32 %v1283_v48, 0.0  ;;  %v1771_v19 = vmax.f32 %v1403_v12, 0.0  ;;  %2946 = vmatmul.msk.bf16.gmra.mxu0 %vm912_vm2, %v3044_v2  ;;  %2970 = vmatmul.msk.bf16.gmra.mxu1 %vm912_vm2, %v3068_v3 }
 0x165   : > { %2450 = vst.msk [vmem:[%s3315_s14 + $0xc0] sm:$0xff] %vm2425_vm3, %v2401_v14  ;;  %v2014_v21 = vmul.f32 %v3620_v39, %v1818_v15  ;;  %v2062_v22 = vmul.f32 %v3620_v39, %v1866_v16  ;;  %2994 = vmatmul.msk.bf16.gmra.mxu2 %vm912_vm2, %v3092_v10  ;;  %3018 = vmatmul.msk.bf16.gmra.mxu3 %vm912_vm2, %v3116_v11 }
 0x166   : > { %v1919_v23 = vmul.f32 %v3620_v39, %v1723_v18  ;;  %v1967_v26 = vmul.f32 %v3620_v39, %v1771_v19 }
 0x167   : > { %v2210_v24 = vadd.f32 %v3636_v52, %v2014_v21  ;;  %v2258_v25 = vadd.f32 %v3636_v52, %v2062_v22 }
 0x168   : > { %v1522_v27 = vpop.f32.mrf.mxu2  ;;  %v1642_v28 = vpop.f32.mrf.mxu3  ;;  %v2115_v35 = vadd.f32 %v3636_v52, %v1919_v23  ;;  %v2163_v40 = vadd.f32 %v3636_v52, %v1967_v26 }
 0x169   : > { %v2354_v30 = vmax.f32 %v2210_v24, %v2258_v25  ;;  %v1523_v31 = vadd.f32 %v3629_v13, %v1522_v27  ;;  %v1643_v32 = vadd.f32 %v3629_v13, %v1642_v28  ;;  %v1284_v33 = vpop.f32.mrf.mxu0  ;;  %v1404_v34 = vpop.f32.mrf.mxu1 }
 0x16a   : > { %v1285_v36 = vadd.f32 %v3629_v13, %v1284_v33  ;;  %v1405_v37 = vadd.f32 %v3629_v13, %v1404_v34  ;;  %v2307_v47 = vmax.f32 %v2115_v35, %v2163_v40 }
 0x16b   : > { %v2402_v38 = vmax.f32 %v2306_v29, %v2354_v30  ;;  %v1819_v41 = vmax.f32 %v1523_v31, 0.0  ;;  %v1867_v42 = vmax.f32 %v1643_v32, 0.0 }
 0x16c   : > { %v1724_v43 = vmax.f32 %v1285_v36, 0.0  ;;  %v1772_v46 = vmax.f32 %v1405_v37, 0.0 }
 0x16d   : > { %2451 = vst.msk [vmem:[%s3315_s14 + $0xc8] sm:$0xff] %vm2425_vm3, %v2402_v38  ;;  %v2015_v44 = vmul.f32 %v3620_v39, %v1819_v41  ;;  %v2063_v45 = vmul.f32 %v3620_v39, %v1867_v42  ;;  %v3046_v42 = vld [vmem:[%s3199_s28 + $0xb8] sm:$0xff] }
 0x16e   : > { %v1920_v51 = vmul.f32 %v3620_v39, %v1724_v43  ;;  %v1968_v58 = vmul.f32 %v3620_v39, %v1772_v46  ;;  %v3070_v43 = vld [vmem:[%s3199_s28 + $0x178] sm:$0xff] }
 0x16f   : > { %v2211_v49 = vadd.f32 %v3636_v52, %v2015_v44  ;;  %v2259_v50 = vadd.f32 %v3636_v52, %v2063_v45 }
 0x170   : > { %v1524_v53 = vpop.f32.mrf.mxu2  ;;  %v1644_v54 = vpop.f32.mrf.mxu3  ;;  %v2116_v6 = vadd.f32 %v3636_v52, %v1920_v51  ;;  %v2164_v9 = vadd.f32 %v3636_v52, %v1968_v58  ;;  %v3094_v51 = vld [vmem:[%s3199_s28 + $0x238] sm:$0xff] }
 0x171   : > { %v2355_v57 = vmax.f32 %v2211_v49, %v2259_v50  ;;  %v1525_v59 = vadd.f32 %v3629_v13, %v1524_v53  ;;  %v1645_v60 = vadd.f32 %v3629_v13, %v1644_v54  ;;  %v1287_v61 = vpop.f32.mrf.mxu0  ;;  %v1407_v62 = vpop.f32.mrf.mxu1  ;;  %v3118_v53 = vld [vmem:[%s3199_s28 + $0x2f8] sm:$0xff] }
 0x172   : > { %v1288_v1 = vadd.f32 %v3629_v13, %v1287_v61  ;;  %v1408_v2 = vadd.f32 %v3629_v13, %v1407_v62  ;;  %v2308_v18 = vmax.f32 %v2116_v6, %v2164_v9 }
 0x173   : > { %v2403_v3 = vmax.f32 %v2307_v47, %v2355_v57  ;;  %v1820_v4 = vmax.f32 %v1525_v59, 0.0  ;;  %v1868_v5 = vmax.f32 %v1645_v60, 0.0 }
 0x174   : > { %v1725_v7 = vmax.f32 %v1288_v1, 0.0  ;;  %v1773_v8 = vmax.f32 %v1408_v2, 0.0  ;;  %2947 = vmatmul.msk.bf16.gmra.mxu0 %vm912_vm2, %v3045_v55  ;;  %2971 = vmatmul.msk.bf16.gmra.mxu1 %vm912_vm2, %v3069_v56 }
 0x175   : > { %2452 = vst.msk [vmem:[%s3315_s14 + $0xd0] sm:$0xff] %vm2425_vm3, %v2403_v3  ;;  %v2016_v10 = vmul.f32 %v3620_v39, %v1820_v4  ;;  %v2064_v11 = vmul.f32 %v3620_v39, %v1868_v5  ;;  %2995 = vmatmul.msk.bf16.gmra.mxu2 %vm912_vm2, %v3093_v63  ;;  %3019 = vmatmul.msk.bf16.gmra.mxu3 %vm912_vm2, %v3117_v0 }
 0x176   : > { %v1921_v48 = vmul.f32 %v3620_v39, %v1725_v7  ;;  %v1969_v15 = vmul.f32 %v3620_v39, %v1773_v8 }
 0x177   : > { %v2212_v12 = vadd.f32 %v3636_v52, %v2016_v10  ;;  %v2260_v14 = vadd.f32 %v3636_v52, %v2064_v11 }
 0x178   : > { %v1527_v16 = vpop.f32.mrf.mxu2  ;;  %v1647_v17 = vpop.f32.mrf.mxu3  ;;  %v2117_v24 = vadd.f32 %v3636_v52, %v1921_v48  ;;  %v2165_v28 = vadd.f32 %v3636_v52, %v1969_v15 }
 0x179   : > { %v2356_v19 = vmax.f32 %v2212_v12, %v2260_v14  ;;  %v1528_v20 = vadd.f32 %v3629_v13, %v1527_v16  ;;  %v1648_v21 = vadd.f32 %v3629_v13, %v1647_v17  ;;  %v1289_v22 = vpop.f32.mrf.mxu0  ;;  %v1409_v23 = vpop.f32.mrf.mxu1 }
 0x17a   : > { %v1290_v25 = vadd.f32 %v3629_v13, %v1289_v22  ;;  %v1410_v26 = vadd.f32 %v3629_v13, %v1409_v23  ;;  %v2309_v35 = vmax.f32 %v2117_v24, %v2165_v28 }
 0x17b   : > { %v2404_v27 = vmax.f32 %v2308_v18, %v2356_v19  ;;  %v1821_v29 = vmax.f32 %v1528_v20, 0.0  ;;  %v1869_v30 = vmax.f32 %v1648_v21, 0.0 }
 0x17c   : > { %v1726_v31 = vmax.f32 %v1290_v25, 0.0  ;;  %v1774_v34 = vmax.f32 %v1410_v26, 0.0 }
 0x17d   : > { %2453 = vst.msk [vmem:[%s3315_s14 + $0xd8] sm:$0xff] %vm2425_vm3, %v2404_v27  ;;  %v2017_v32 = vmul.f32 %v3620_v39, %v1821_v29  ;;  %v2065_v33 = vmul.f32 %v3620_v39, %v1869_v30 }
 0x17e   : > { %v1922_v38 = vmul.f32 %v3620_v39, %v1726_v31  ;;  %v1970_v45 = vmul.f32 %v3620_v39, %v1774_v34 }
 0x17f   : > { %v2213_v36 = vadd.f32 %v3636_v52, %v2017_v32  ;;  %v2261_v37 = vadd.f32 %v3636_v52, %v2065_v33 }
 0x180   : > { %v1529_v40 = vpop.f32.mrf.mxu2  ;;  %v1649_v41 = vpop.f32.mrf.mxu3  ;;  %v2118_v59 = vadd.f32 %v3636_v52, %v1922_v38  ;;  %v2166_v62 = vadd.f32 %v3636_v52, %v1970_v45 }
 0x181   : > { %v2357_v44 = vmax.f32 %v2213_v36, %v2261_v37  ;;  %v1530_v46 = vadd.f32 %v3629_v13, %v1529_v40  ;;  %v1650_v47 = vadd.f32 %v3629_v13, %v1649_v41  ;;  %v1292_v49 = vpop.f32.mrf.mxu0  ;;  %v1412_v50 = vpop.f32.mrf.mxu1 }
 0x182   : > { %v1293_v54 = vadd.f32 %v3629_v13, %v1292_v49  ;;  %v1413_v55 = vadd.f32 %v3629_v13, %v1412_v50  ;;  %v2310_v7 = vmax.f32 %v2118_v59, %v2166_v62 }
 0x183   : > { %v2405_v56 = vmax.f32 %v2309_v35, %v2357_v44  ;;  %v1822_v57 = vmax.f32 %v1530_v46, 0.0  ;;  %v1870_v58 = vmax.f32 %v1650_v47, 0.0 }
 0x184   : > { %v1727_v60 = vmax.f32 %v1293_v54, 0.0  ;;  %v1775_v61 = vmax.f32 %v1413_v55, 0.0  ;;  %2948 = vmatmul.msk.bf16.gmra.mxu0 %vm912_vm2, %v3046_v42  ;;  %2972 = vmatmul.msk.bf16.gmra.mxu1 %vm912_vm2, %v3070_v43 }
 0x185   : > { %2454 = vst.msk [vmem:[%s3315_s14 + $0xe0] sm:$0xff] %vm2425_vm3, %v2405_v56  ;;  %v2018_v63 = vmul.f32 %v3620_v39, %v1822_v57  ;;  %v2066_v0 = vmul.f32 %v3620_v39, %v1870_v58  ;;  %2996 = vmatmul.msk.bf16.gmra.mxu2 %vm912_vm2, %v3094_v51  ;;  %3020 = vmatmul.msk.bf16.gmra.mxu3 %vm912_vm2, %v3118_v53 }
 0x186   : > { %v1923_v1 = vmul.f32 %v3620_v39, %v1727_v60  ;;  %v1971_v4 = vmul.f32 %v3620_v39, %v1775_v61 }
 0x187   : > { %v2214_v2 = vadd.f32 %v3636_v52, %v2018_v63  ;;  %v2262_v3 = vadd.f32 %v3636_v52, %v2066_v0 }
 0x188   : > { %v1532_v5 = vpop.f32.mrf.mxu2  ;;  %v1652_v6 = vpop.f32.mrf.mxu3  ;;  %v2119_v12 = vadd.f32 %v3636_v52, %v1923_v1  ;;  %v2167_v17 = vadd.f32 %v3636_v52, %v1971_v4 }
 0x189   : > { %v2358_v8 = vmax.f32 %v2214_v2, %v2262_v3  ;;  %v1533_v9 = vadd.f32 %v3629_v13, %v1532_v5  ;;  %v1653_v10 = vadd.f32 %v3629_v13, %v1652_v6  ;;  %v1294_v11 = vpop.f32.mrf.mxu0  ;;  %v1414_v48 = vpop.f32.mrf.mxu1 }
 0x18a   : > { %v1295_v14 = vadd.f32 %v3629_v13, %v1294_v11  ;;  %v1415_v15 = vadd.f32 %v3629_v13, %v1414_v48  ;;  %v2311_v24 = vmax.f32 %v2119_v12, %v2167_v17 }
 0x18b   : > { %v2406_v16 = vmax.f32 %v2310_v7, %v2358_v8  ;;  %v1823_v18 = vmax.f32 %v1533_v9, 0.0  ;;  %v1871_v19 = vmax.f32 %v1653_v10, 0.0 }
 0x18c   : > { %v1728_v20 = vmax.f32 %v1295_v14, 0.0  ;;  %v1776_v23 = vmax.f32 %v1415_v15, 0.0 }
 0x18d   : > { %2455 = vst.msk [vmem:[%s3315_s14 + $0xe8] sm:$0xff] %vm2425_vm3, %v2406_v16  ;;  %v2019_v21 = vmul.f32 %v3620_v39, %v1823_v18  ;;  %v2067_v22 = vmul.f32 %v3620_v39, %v1871_v19 }
 0x18e   : > { %v1924_v27 = vmul.f32 %v3620_v39, %v1728_v20  ;;  %v1972_v31 = vmul.f32 %v3620_v39, %v1776_v23 }
 0x18f   : > { %v2215_v25 = vadd.f32 %v3636_v52, %v2019_v21  ;;  %v2263_v26 = vadd.f32 %v3636_v52, %v2067_v22 }
 0x190   : > { %v1534_v28 = vpop.f32.mrf.mxu2  ;;  %v1654_v29 = vpop.f32.mrf.mxu3  ;;  %v2120_v44 = vadd.f32 %v3636_v52, %v1924_v27  ;;  %v2168_v45 = vadd.f32 %v3636_v52, %v1972_v31 }
 0x191   : > { %v2359_v30 = vmax.f32 %v2215_v25, %v2263_v26  ;;  %v1535_v32 = vadd.f32 %v3629_v13, %v1534_v28  ;;  %v1655_v33 = vadd.f32 %v3629_v13, %v1654_v29  ;;  %v1297_v34 = vpop.f32.mrf.mxu0  ;;  %v1417_v35 = vpop.f32.mrf.mxu1 }
 0x192   : > { %v1298_v36 = vadd.f32 %v3629_v13, %v1297_v34  ;;  %v1418_v37 = vadd.f32 %v3629_v13, %v1417_v35  ;;  %v2312_v56 = vmax.f32 %v2120_v44, %v2168_v45 }
 0x193   : > { %v2407_v38 = vmax.f32 %v2311_v24, %v2359_v30  ;;  %v1824_v40 = vmax.f32 %v1535_v32, 0.0  ;;  %v1872_v41 = vmax.f32 %v1655_v33, 0.0 }
 0x194   : > { %v1729_v42 = vmax.f32 %v1298_v36, 0.0  ;;  %v1777_v43 = vmax.f32 %v1418_v37, 0.0 }
 0x195   : > { %2456 = vst.msk [vmem:[%s3315_s14 + $0xf0] sm:$0xff] %vm2425_vm3, %v2407_v38  ;;  %v2020_v46 = vmul.f32 %v3620_v39, %v1824_v40  ;;  %v2068_v47 = vmul.f32 %v3620_v39, %v1872_v41 }
 0x196   : > { %v1925_v49 = vmul.f32 %v3620_v39, %v1729_v42  ;;  %v1973_v53 = vmul.f32 %v3620_v39, %v1777_v43 }
 0x197   : > { %v2216_v50 = vadd.f32 %v3636_v52, %v2020_v46  ;;  %v2264_v51 = vadd.f32 %v3636_v52, %v2068_v47 }
 0x198   : > { %v1537_v54 = vpop.f32.mrf.mxu2  ;;  %v1657_v55 = vpop.f32.mrf.mxu3  ;;  %v2121_v62 = vadd.f32 %v3636_v52, %v1925_v49  ;;  %v2169_v2 = vadd.f32 %v3636_v52, %v1973_v53 }
 0x199   : > { %v2360_v57 = vmax.f32 %v2216_v50, %v2264_v51  ;;  %v1538_v58 = vadd.f32 %v3629_v13, %v1537_v54  ;;  %v1658_v59 = vadd.f32 %v3629_v13, %v1657_v55  ;;  %v1299_v60 = vpop.f32.mrf.mxu0  ;;  %v1419_v61 = vpop.f32.mrf.mxu1 }
 0x19a   : > { %v1300_v63 = vadd.f32 %v3629_v13, %v1299_v60  ;;  %v1420_v0 = vadd.f32 %v3629_v13, %v1419_v61  ;;  %v2313_v9 = vmax.f32 %v2121_v62, %v2169_v2 }
 0x19b   : > { %v2408_v1 = vmax.f32 %v2312_v56, %v2360_v57  ;;  %v1825_v3 = vmax.f32 %v1538_v58, 0.0  ;;  %v1873_v4 = vmax.f32 %v1658_v59, 0.0 }
 0x19c   : > { %v1730_v5 = vmax.f32 %v1300_v63, 0.0  ;;  %v1778_v8 = vmax.f32 %v1420_v0, 0.0 }
 0x19d   : > { %2457 = vst.msk [vmem:[%s3315_s14 + $0xf8] sm:$0xff] %vm2425_vm3, %v2408_v1  ;;  %v2021_v6 = vmul.f32 %v3620_v39, %v1825_v3  ;;  %v2069_v7 = vmul.f32 %v3620_v39, %v1873_v4 }
 0x19e   : > { %v1926_v48 = vmul.f32 %v3620_v39, %v1730_v5  ;;  %v1974_v16 = vmul.f32 %v3620_v39, %v1778_v8 }
 0x19f   : > { %v2217_v10 = vadd.f32 %v3636_v52, %v2021_v6  ;;  %v2265_v11 = vadd.f32 %v3636_v52, %v2069_v7 }
 0x1a0   : > { %v1539_v12 = vpop.f32.mrf.mxu2  ;;  %v1659_v14 = vpop.f32.mrf.mxu3  ;;  %v2122_v28 = vadd.f32 %v3636_v52, %v1926_v48  ;;  %v2170_v29 = vadd.f32 %v3636_v52, %v1974_v16 }
 0x1a1   : > { %v2361_v15 = vmax.f32 %v2217_v10, %v2265_v11  ;;  %v1540_v17 = vadd.f32 %v3629_v13, %v1539_v12  ;;  %v1660_v18 = vadd.f32 %v3629_v13, %v1659_v14  ;;  %v1302_v19 = vpop.f32.mrf.mxu0  ;;  %v1422_v20 = vpop.f32.mrf.mxu1 }
 0x1a2   : > { %v1303_v21 = vadd.f32 %v3629_v13, %v1302_v19  ;;  %v1423_v22 = vadd.f32 %v3629_v13, %v1422_v20  ;;  %v2314_v38 = vmax.f32 %v2122_v28, %v2170_v29 }
 0x1a3   : > { %v2409_v23 = vmax.f32 %v2313_v9, %v2361_v15  ;;  %v1826_v24 = vmax.f32 %v1540_v17, 0.0  ;;  %v1874_v25 = vmax.f32 %v1660_v18, 0.0 }
 0x1a4   : > { %v1731_v26 = vmax.f32 %v1303_v21, 0.0  ;;  %v1779_v27 = vmax.f32 %v1423_v22, 0.0 }
 0x1a5   : > { %2458 = vst.msk [vmem:[%s3315_s14 + $0x100] sm:$0xff] %vm2425_vm3, %v2409_v23  ;;  %v2022_v30 = vmul.f32 %v3620_v39, %v1826_v24  ;;  %v2070_v31 = vmul.f32 %v3620_v39, %v1874_v25 }
 0x1a6   : > { %v1927_v32 = vmul.f32 %v3620_v39, %v1731_v26  ;;  %v1975_v35 = vmul.f32 %v3620_v39, %v1779_v27 }
 0x1a7   : > { %v2218_v33 = vadd.f32 %v3636_v52, %v2022_v30  ;;  %v2266_v34 = vadd.f32 %v3636_v52, %v2070_v31 }
 0x1a8   : > { %v1542_v36 = vpop.f32.mrf.mxu2  ;;  %v1662_v37 = vpop.f32.mrf.mxu3  ;;  %v2123_v45 = vadd.f32 %v3636_v52, %v1927_v32  ;;  %v2171_v50 = vadd.f32 %v3636_v52, %v1975_v35 }
 0x1a9   : > { %v2362_v40 = vmax.f32 %v2218_v33, %v2266_v34  ;;  %v1543_v41 = vadd.f32 %v3629_v13, %v1542_v36  ;;  %v1663_v42 = vadd.f32 %v3629_v13, %v1662_v37  ;;  %v1304_v43 = vpop.f32.mrf.mxu0  ;;  %v1424_v44 = vpop.f32.mrf.mxu1 }
 0x1aa   : > { %v1305_v46 = vadd.f32 %v3629_v13, %v1304_v43  ;;  %v1425_v47 = vadd.f32 %v3629_v13, %v1424_v44  ;;  %v2315_v58 = vmax.f32 %v2123_v45, %v2171_v50 }
 0x1ab   : > { %v2410_v49 = vmax.f32 %v2314_v38, %v2362_v40  ;;  %v1827_v51 = vmax.f32 %v1543_v41, 0.0  ;;  %v1875_v53 = vmax.f32 %v1663_v42, 0.0 }
 0x1ac   : > { %v1732_v54 = vmax.f32 %v1305_v46, 0.0  ;;  %v1780_v57 = vmax.f32 %v1425_v47, 0.0 }
 0x1ad   : > { %2459 = vst.msk [vmem:[%s3315_s14 + $0x108] sm:$0xff] %vm2425_vm3, %v2410_v49  ;;  %v2023_v55 = vmul.f32 %v3620_v39, %v1827_v51  ;;  %v2071_v56 = vmul.f32 %v3620_v39, %v1875_v53 }
 0x1ae   : > { %v1928_v61 = vmul.f32 %v3620_v39, %v1732_v54  ;;  %v1976_v1 = vmul.f32 %v3620_v39, %v1780_v57 }
 0x1af   : > { %v2219_v59 = vadd.f32 %v3636_v52, %v2023_v55  ;;  %v2267_v60 = vadd.f32 %v3636_v52, %v2071_v56 }
 0x1b0   : > { %v1544_v62 = vpop.f32.mrf.mxu2  ;;  %v1664_v63 = vpop.f32.mrf.mxu3  ;;  %v2124_v12 = vadd.f32 %v3636_v52, %v1928_v61  ;;  %v2172_v14 = vadd.f32 %v3636_v52, %v1976_v1 }
 0x1b1   : > { %v2363_v0 = vmax.f32 %v2219_v59, %v2267_v60  ;;  %v1545_v2 = vadd.f32 %v3629_v13, %v1544_v62  ;;  %v1665_v3 = vadd.f32 %v3629_v13, %v1664_v63  ;;  %v1307_v4 = vpop.f32.mrf.mxu0  ;;  %v1427_v5 = vpop.f32.mrf.mxu1 }
 0x1b2   : > { %v1308_v6 = vadd.f32 %v3629_v13, %v1307_v4  ;;  %v1428_v7 = vadd.f32 %v3629_v13, %v1427_v5  ;;  %v2316_v23 = vmax.f32 %v2124_v12, %v2172_v14 }
 0x1b3   : > { %v2411_v8 = vmax.f32 %v2315_v58, %v2363_v0  ;;  %v1828_v9 = vmax.f32 %v1545_v2, 0.0  ;;  %v1876_v10 = vmax.f32 %v1665_v3, 0.0 }
 0x1b4   : > { %v1733_v11 = vmax.f32 %v1308_v6, 0.0  ;;  %v1781_v48 = vmax.f32 %v1428_v7, 0.0 }
 0x1b5   : > { %2460 = vst.msk [vmem:[%s3315_s14 + $0x110] sm:$0xff] %vm2425_vm3, %v2411_v8  ;;  %v2024_v15 = vmul.f32 %v3620_v39, %v1828_v9  ;;  %v2072_v16 = vmul.f32 %v3620_v39, %v1876_v10  ;;  %v3977_v9 = vld [vmem:[%s4122_s2] ss:$0 sm:$0xff] }
 0x1b6   : > { %v1929_v17 = vmul.f32 %v3620_v39, %v1733_v11  ;;  %v1977_v20 = vmul.f32 %v3620_v39, %v1781_v48 }
 0x1b7   : > { %v2220_v18 = vadd.f32 %v3636_v52, %v2024_v15  ;;  %v2268_v19 = vadd.f32 %v3636_v52, %v2072_v16 }
 0x1b8   : > { %v1547_v21 = vpop.f32.mrf.mxu2  ;;  %v1667_v22 = vpop.f32.mrf.mxu3  ;;  %v2125_v29 = vadd.f32 %v3636_v52, %v1929_v17  ;;  %v2173_v33 = vadd.f32 %v3636_v52, %v1977_v20 }
 0x1b9   : > { %v2364_v24 = vmax.f32 %v2220_v18, %v2268_v19  ;;  %v1548_v25 = vadd.f32 %v3629_v13, %v1547_v21  ;;  %v1668_v26 = vadd.f32 %v3629_v13, %v1667_v22  ;;  %v1309_v27 = vpop.f32.mrf.mxu0  ;;  %v1429_v28 = vpop.f32.mrf.mxu1 }
 0x1ba   : > { %v1310_v30 = vadd.f32 %v3629_v13, %v1309_v27  ;;  %v1430_v31 = vadd.f32 %v3629_v13, %v1429_v28  ;;  %v2317_v41 = vmax.f32 %v2125_v29, %v2173_v33 }
 0x1bb   : > { %v2412_v32 = vmax.f32 %v2316_v23, %v2364_v24  ;;  %v1829_v34 = vmax.f32 %v1548_v25, 0.0  ;;  %v1877_v35 = vmax.f32 %v1668_v26, 0.0 }
 0x1bc   : > { %v1734_v36 = vmax.f32 %v1310_v30, 0.0  ;;  %v1782_v40 = vmax.f32 %v1430_v31, 0.0 }
 0x1bd   : > { %2461 = vst.msk [vmem:[%s3315_s14 + $0x118] sm:$0xff] %vm2425_vm3, %v2412_v32  ;;  %v2025_v37 = vmul.f32 %v3620_v39, %v1829_v34  ;;  %v2073_v38 = vmul.f32 %v3620_v39, %v1877_v35 }
 0x1be   : > { %v1930_v44 = vmul.f32 %v3620_v39, %v1734_v36  ;;  %v1978_v49 = vmul.f32 %v3620_v39, %v1782_v40  ;;  %v3959_v39 = vld [vmem:[%s4124_s4] ss:$0 sm:$0xff] }
 0x1bf   : > { %v2221_v42 = vadd.f32 %v3636_v52, %v2025_v37  ;;  %v2269_v43 = vadd.f32 %v3636_v52, %v2073_v38 }
 0x1c0   : > { %v1549_v45 = vpop.f32.mrf.mxu2  ;;  %v1669_v46 = vpop.f32.mrf.mxu3  ;;  %v2126_v61 = vadd.f32 %v3959_v39, %v1930_v44  ;;  %v2174_v62 = vadd.f32 %v3959_v39, %v1978_v49 }
 0x1c1   : > { %v2365_v47 = vmax.f32 %v2221_v42, %v2269_v43  ;;  %v1550_v50 = vadd.f32 %v3629_v13, %v1549_v45  ;;  %v1670_v51 = vadd.f32 %v3629_v13, %v1669_v46  ;;  %v1312_v53 = vpop.f32.mrf.mxu0  ;;  %v1432_v54 = vpop.f32.mrf.mxu1 }
 0x1c2   : > { %v1313_v55 = vadd.f32 %v3629_v13, %v1312_v53  ;;  %v1433_v56 = vadd.f32 %v3629_v13, %v1432_v54  ;;  %v3966_v13 = vld [vmem:[%s4123_s3] ss:$0 sm:$0xff]  ;;  %v2318_v7 = vmax.f32 %v2126_v61, %v2174_v62 }
 0x1c3   : > { %v2413_v57 = vmax.f32 %v2317_v41, %v2365_v47  ;;  %v1830_v52 = vmax.f32 %v1550_v50, 0.0  ;;  %v1878_v58 = vmax.f32 %v1670_v51, 0.0 }
 0x1c4   : > { %v1735_v59 = vmax.f32 %v1313_v55, 0.0  ;;  %v1783_v60 = vmax.f32 %v1433_v56, 0.0 }
 0x1c5   : > { %2462 = vst.msk [vmem:[%s3315_s14 + $0x120] sm:$0xff] %vm2425_vm3, %v2413_v57  ;;  %v2026_v63 = vmul.f32 %v3966_v13, %v1830_v52  ;;  %v2074_v0 = vmul.f32 %v3966_v13, %v1878_v58 }
 0x1c6   : > { %v1931_v1 = vmul.f32 %v3966_v13, %v1735_v59  ;;  %v1979_v4 = vmul.f32 %v3966_v13, %v1783_v60 }
 0x1c7   : > { %v2222_v2 = vadd.f32 %v3959_v39, %v2026_v63  ;;  %v2270_v3 = vadd.f32 %v3959_v39, %v2074_v0 }
 0x1c8   : > { %v1552_v5 = vpop.f32.mrf.mxu2  ;;  %v1672_v6 = vpop.f32.mrf.mxu3  ;;  %v2127_v14 = vadd.f32 %v3959_v39, %v1931_v1  ;;  %v2175_v18 = vadd.f32 %v3959_v39, %v1979_v4 }
 0x1c9   : > { %v2366_v8 = vmax.f32 %v2222_v2, %v2270_v3  ;;  %v1553_v10 = vadd.f32 %v3977_v9, %v1552_v5  ;;  %v1673_v11 = vadd.f32 %v3977_v9, %v1672_v6  ;;  %v1314_v48 = vpop.f32.mrf.mxu0  ;;  %v1434_v12 = vpop.f32.mrf.mxu1 }
 0x1ca   : > { %v1315_v15 = vadd.f32 %v3977_v9, %v1314_v48  ;;  %v1435_v16 = vadd.f32 %v3977_v9, %v1434_v12  ;;  %v2319_v25 = vmax.f32 %v2127_v14, %v2175_v18 }
 0x1cb   : > { %v2414_v17 = vmax.f32 %v2318_v7, %v2366_v8  ;;  %v1831_v19 = vmax.f32 %v1553_v10, 0.0  ;;  %v1879_v20 = vmax.f32 %v1673_v11, 0.0 }
 0x1cc   : > { %v1736_v21 = vmax.f32 %v1315_v15, 0.0  ;;  %v1784_v24 = vmax.f32 %v1435_v16, 0.0 }
 0x1cd   : > { %2463 = vst.msk [vmem:[%s3315_s14 + $0x128] sm:$0xff] %vm2425_vm3, %v2414_v17  ;;  %v2027_v22 = vmul.f32 %v3966_v13, %v1831_v19  ;;  %v2075_v23 = vmul.f32 %v3966_v13, %v1879_v20 }
 0x1ce   : > { %v1932_v28 = vmul.f32 %v3966_v13, %v1736_v21  ;;  %v1980_v32 = vmul.f32 %v3966_v13, %v1784_v24 }
 0x1cf   : > { %v2223_v26 = vadd.f32 %v3959_v39, %v2027_v22  ;;  %v2271_v27 = vadd.f32 %v3959_v39, %v2075_v23 }
 0x1d0   : > { %v1554_v29 = vpop.f32.mrf.mxu2  ;;  %v1674_v30 = vpop.f32.mrf.mxu3  ;;  %v2128_v45 = vadd.f32 %v3959_v39, %v1932_v28  ;;  %v2176_v46 = vadd.f32 %v3959_v39, %v1980_v32 }
 0x1d1   : > { %v2367_v31 = vmax.f32 %v2223_v26, %v2271_v27  ;;  %v1555_v33 = vadd.f32 %v3977_v9, %v1554_v29  ;;  %v1675_v34 = vadd.f32 %v3977_v9, %v1674_v30  ;;  %v1317_v35 = vpop.f32.mrf.mxu0  ;;  %v1437_v36 = vpop.f32.mrf.mxu1 }
 0x1d2   : > { %v1318_v37 = vadd.f32 %v3977_v9, %v1317_v35  ;;  %v1438_v38 = vadd.f32 %v3977_v9, %v1437_v36  ;;  %v2320_v57 = vmax.f32 %v2128_v45, %v2176_v46 }
 0x1d3   : > { %v2415_v40 = vmax.f32 %v2319_v25, %v2367_v31  ;;  %v1832_v41 = vmax.f32 %v1555_v33, 0.0  ;;  %v1880_v42 = vmax.f32 %v1675_v34, 0.0 }
 0x1d4   : > { %v1737_v43 = vmax.f32 %v1318_v37, 0.0  ;;  %v1785_v44 = vmax.f32 %v1438_v38, 0.0 }
 0x1d5   : > { %2464 = vst.msk [vmem:[%s3315_s14 + $0x130] sm:$0xff] %vm2425_vm3, %v2415_v40  ;;  %v2028_v47 = vmul.f32 %v3966_v13, %v1832_v41  ;;  %v2076_v49 = vmul.f32 %v3966_v13, %v1880_v42 }
 0x1d6   : > { %v1933_v50 = vmul.f32 %v3966_v13, %v1737_v43  ;;  %v1981_v54 = vmul.f32 %v3966_v13, %v1785_v44 }
 0x1d7   : > { %v2224_v51 = vadd.f32 %v3959_v39, %v2028_v47  ;;  %v2272_v53 = vadd.f32 %v3959_v39, %v2076_v49 }
 0x1d8   : > { %v1557_v55 = vpop.f32.mrf.mxu2  ;;  %v1677_v56 = vpop.f32.mrf.mxu3  ;;  %v2129_v62 = vadd.f32 %v3959_v39, %v1933_v50  ;;  %v2177_v2 = vadd.f32 %v3959_v39, %v1981_v54 }
 0x1d9   : > { %v2368_v52 = vmax.f32 %v2224_v51, %v2272_v53  ;;  %v1558_v58 = vadd.f32 %v3977_v9, %v1557_v55  ;;  %v1678_v59 = vadd.f32 %v3977_v9, %v1677_v56  ;;  %v1319_v60 = vpop.f32.mrf.mxu0  ;;  %v1439_v61 = vpop.f32.mrf.mxu1 }
 0x1da   : > { %v1320_v63 = vadd.f32 %v3977_v9, %v1319_v60  ;;  %v1440_v0 = vadd.f32 %v3977_v9, %v1439_v61  ;;  %v2321_v10 = vmax.f32 %v2129_v62, %v2177_v2 }
 0x1db   : > { %v2416_v1 = vmax.f32 %v2320_v57, %v2368_v52  ;;  %v1833_v3 = vmax.f32 %v1558_v58, 0.0  ;;  %v1881_v4 = vmax.f32 %v1678_v59, 0.0 }
 0x1dc   : > { %v1738_v5 = vmax.f32 %v1320_v63, 0.0  ;;  %v1786_v8 = vmax.f32 %v1440_v0, 0.0 }
 0x1dd   : > { %2465 = vst.msk [vmem:[%s3315_s14 + $0x138] sm:$0xff] %vm2425_vm3, %v2416_v1  ;;  %v2029_v6 = vmul.f32 %v3966_v13, %v1833_v3  ;;  %v2077_v7 = vmul.f32 %v3966_v13, %v1881_v4 }
 0x1de   : > { %v1934_v12 = vmul.f32 %v3966_v13, %v1738_v5  ;;  %v1982_v17 = vmul.f32 %v3966_v13, %v1786_v8 }
 0x1df   : > { %v2225_v11 = vadd.f32 %v3959_v39, %v2029_v6  ;;  %v2273_v48 = vadd.f32 %v3959_v39, %v2077_v7 }
 0x1e0   : > { %v1559_v14 = vpop.f32.mrf.mxu2  ;;  %v1679_v15 = vpop.f32.mrf.mxu3  ;;  %v2130_v29 = vadd.f32 %v3959_v39, %v1934_v12  ;;  %v2178_v30 = vadd.f32 %v3959_v39, %v1982_v17 }
 0x1e1   : > { %v2369_v16 = vmax.f32 %v2225_v11, %v2273_v48  ;;  %v1560_v18 = vadd.f32 %v3977_v9, %v1559_v14  ;;  %v1680_v19 = vadd.f32 %v3977_v9, %v1679_v15  ;;  %v1322_v20 = vpop.f32.mrf.mxu0  ;;  %v1442_v21 = vpop.f32.mrf.mxu1 }
 0x1e2   : > { %v1323_v22 = vadd.f32 %v3977_v9, %v1322_v20  ;;  %v1443_v23 = vadd.f32 %v3977_v9, %v1442_v21  ;;  %v2322_v40 = vmax.f32 %v2130_v29, %v2178_v30 }
 0x1e3   : > { %v2417_v24 = vmax.f32 %v2321_v10, %v2369_v16  ;;  %v1834_v25 = vmax.f32 %v1560_v18, 0.0  ;;  %v1882_v26 = vmax.f32 %v1680_v19, 0.0 }
 0x1e4   : > { %v1739_v27 = vmax.f32 %v1323_v22, 0.0  ;;  %v1787_v28 = vmax.f32 %v1443_v23, 0.0 }
 0x1e5   : > { %2466 = vst.msk [vmem:[%s3315_s14 + $0x140] sm:$0xff] %vm2425_vm3, %v2417_v24  ;;  %v2030_v31 = vmul.f32 %v3966_v13, %v1834_v25  ;;  %v2078_v32 = vmul.f32 %v3966_v13, %v1882_v26 }
 0x1e6   : > { %v1935_v33 = vmul.f32 %v3966_v13, %v1739_v27  ;;  %v1983_v36 = vmul.f32 %v3966_v13, %v1787_v28 }
 0x1e7   : > { %v2226_v34 = vadd.f32 %v3959_v39, %v2030_v31  ;;  %v2274_v35 = vadd.f32 %v3959_v39, %v2078_v32 }
 0x1e8   : > { %v1562_v37 = vpop.f32.mrf.mxu2  ;;  %v1682_v38 = vpop.f32.mrf.mxu3  ;;  %v2131_v46 = vadd.f32 %v3959_v39, %v1935_v33  ;;  %v2179_v51 = vadd.f32 %v3959_v39, %v1983_v36 }
 0x1e9   : > { %v2370_v41 = vmax.f32 %v2226_v34, %v2274_v35  ;;  %v1563_v42 = vadd.f32 %v3977_v9, %v1562_v37  ;;  %v1683_v43 = vadd.f32 %v3977_v9, %v1682_v38  ;;  %v1324_v44 = vpop.f32.mrf.mxu0  ;;  %v1444_v45 = vpop.f32.mrf.mxu1 }
 0x1ea   : > { %v1325_v47 = vadd.f32 %v3977_v9, %v1324_v44  ;;  %v1445_v49 = vadd.f32 %v3977_v9, %v1444_v45  ;;  %v2323_v58 = vmax.f32 %v2131_v46, %v2179_v51 }
 0x1eb   : > { %v2418_v50 = vmax.f32 %v2322_v40, %v2370_v41  ;;  %v1835_v53 = vmax.f32 %v1563_v42, 0.0  ;;  %v1883_v54 = vmax.f32 %v1683_v43, 0.0 }
 0x1ec   : > { %v1740_v55 = vmax.f32 %v1325_v47, 0.0  ;;  %v1788_v52 = vmax.f32 %v1445_v49, 0.0 }
 0x1ed   : > { %2467 = vst.msk [vmem:[%s3315_s14 + $0x148] sm:$0xff] %vm2425_vm3, %v2418_v50  ;;  %v2031_v56 = vmul.f32 %v3966_v13, %v1835_v53  ;;  %v2079_v57 = vmul.f32 %v3966_v13, %v1883_v54 }
 0x1ee   : > { %v1936_v61 = vmul.f32 %v3966_v13, %v1740_v55  ;;  %v1984_v1 = vmul.f32 %v3966_v13, %v1788_v52 }
 0x1ef   : > { %v2227_v59 = vadd.f32 %v3959_v39, %v2031_v56  ;;  %v2275_v60 = vadd.f32 %v3959_v39, %v2079_v57 }
 0x1f0   : > { %v1564_v62 = vpop.f32.mrf.mxu2  ;;  %v1684_v63 = vpop.f32.mrf.mxu3  ;;  %v2132_v14 = vadd.f32 %v3959_v39, %v1936_v61  ;;  %v2180_v15 = vadd.f32 %v3959_v39, %v1984_v1 }
 0x1f1   : > { %v2371_v0 = vmax.f32 %v2227_v59, %v2275_v60  ;;  %v1565_v2 = vadd.f32 %v3977_v9, %v1564_v62  ;;  %v1685_v3 = vadd.f32 %v3977_v9, %v1684_v63  ;;  %v1327_v4 = vpop.f32.mrf.mxu0  ;;  %v1447_v5 = vpop.f32.mrf.mxu1 }
 0x1f2   : > { %v1328_v6 = vadd.f32 %v3977_v9, %v1327_v4  ;;  %v1448_v7 = vadd.f32 %v3977_v9, %v1447_v5  ;;  %v2324_v24 = vmax.f32 %v2132_v14, %v2180_v15 }
 0x1f3   : > { %v2419_v8 = vmax.f32 %v2323_v58, %v2371_v0  ;;  %v1836_v10 = vmax.f32 %v1565_v2, 0.0  ;;  %v1884_v11 = vmax.f32 %v1685_v3, 0.0 }
 0x1f4   : > { %v1741_v48 = vmax.f32 %v1328_v6, 0.0  ;;  %v1789_v12 = vmax.f32 %v1448_v7, 0.0 }
 0x1f5   : > { %2468 = vst.msk [vmem:[%s3315_s14 + $0x150] sm:$0xff] %vm2425_vm3, %v2419_v8  ;;  %v2032_v16 = vmul.f32 %v3966_v13, %v1836_v10  ;;  %v2080_v17 = vmul.f32 %v3966_v13, %v1884_v11 }
 0x1f6   : > { %v1937_v18 = vmul.f32 %v3966_v13, %v1741_v48  ;;  %v1985_v21 = vmul.f32 %v3966_v13, %v1789_v12 }
 0x1f7   : > { %v2228_v19 = vadd.f32 %v3959_v39, %v2032_v16  ;;  %v2276_v20 = vadd.f32 %v3959_v39, %v2080_v17 }
 0x1f8   : > { %v1567_v22 = vpop.f32.mrf.mxu2  ;;  %v1687_v23 = vpop.f32.mrf.mxu3  ;;  %v2133_v30 = vadd.f32 %v3959_v39, %v1937_v18  ;;  %v2181_v34 = vadd.f32 %v3959_v39, %v1985_v21 }
 0x1f9   : > { %v2372_v25 = vmax.f32 %v2228_v19, %v2276_v20  ;;  %v1568_v26 = vadd.f32 %v3977_v9, %v1567_v22  ;;  %v1688_v27 = vadd.f32 %v3977_v9, %v1687_v23  ;;  %v1329_v28 = vpop.f32.mrf.mxu0  ;;  %v1449_v29 = vpop.f32.mrf.mxu1 }
 0x1fa   : > { %v1330_v31 = vadd.f32 %v3977_v9, %v1329_v28  ;;  %v1450_v32 = vadd.f32 %v3977_v9, %v1449_v29  ;;  %v2325_v42 = vmax.f32 %v2133_v30, %v2181_v34 }
 0x1fb   : > { %v2420_v33 = vmax.f32 %v2324_v24, %v2372_v25  ;;  %v1837_v35 = vmax.f32 %v1568_v26, 0.0  ;;  %v1885_v36 = vmax.f32 %v1688_v27, 0.0 }
 0x1fc   : > { %v1742_v37 = vmax.f32 %v1330_v31, 0.0  ;;  %v1790_v41 = vmax.f32 %v1450_v32, 0.0 }
 0x1fd   : > { %2469 = vst.msk [vmem:[%s3315_s14 + $0x158] sm:$0xff] %vm2425_vm3, %v2420_v33  ;;  %v2033_v38 = vmul.f32 %v3966_v13, %v1837_v35  ;;  %v2081_v40 = vmul.f32 %v3966_v13, %v1885_v36 }
 0x1fe   : > { %v1938_v45 = vmul.f32 %v3966_v13, %v1742_v37  ;;  %v1986_v50 = vmul.f32 %v3966_v13, %v1790_v41 }
 0x1ff   : > { %v2229_v43 = vadd.f32 %v3959_v39, %v2033_v38  ;;  %v2277_v44 = vadd.f32 %v3959_v39, %v2081_v40 }
 0x200   : > { %v1569_v46 = vpop.f32.mrf.mxu2  ;;  %v1689_v47 = vpop.f32.mrf.mxu3  ;;  %v2134_v62 = vadd.f32 %v3959_v39, %v1938_v45  ;;  %v2182_v63 = vadd.f32 %v3959_v39, %v1986_v50 }
 0x201   : > { %v2373_v49 = vmax.f32 %v2229_v43, %v2277_v44  ;;  %v1570_v51 = vadd.f32 %v3977_v9, %v1569_v46  ;;  %v1690_v53 = vadd.f32 %v3977_v9, %v1689_v47  ;;  %v1332_v54 = vpop.f32.mrf.mxu0  ;;  %v1452_v55 = vpop.f32.mrf.mxu1 }
 0x202   : > { %v1333_v56 = vadd.f32 %v3977_v9, %v1332_v54  ;;  %v1453_v57 = vadd.f32 %v3977_v9, %v1452_v55  ;;  %v2326_v8 = vmax.f32 %v2134_v62, %v2182_v63 }
 0x203   : > { %v2421_v52 = vmax.f32 %v2325_v42, %v2373_v49  ;;  %v1838_v58 = vmax.f32 %v1570_v51, 0.0  ;;  %v1886_v59 = vmax.f32 %v1690_v53, 0.0 }
 0x204   : > { %v1743_v60 = vmax.f32 %v1333_v56, 0.0  ;;  %v1791_v61 = vmax.f32 %v1453_v57, 0.0 }
 0x205   : > { %2470 = vst.msk [vmem:[%s3315_s14 + $0x160] sm:$0xff] %vm2425_vm3, %v2421_v52  ;;  %v2034_v0 = vmul.f32 %v3966_v13, %v1838_v58  ;;  %v2082_v1 = vmul.f32 %v3966_v13, %v1886_v59 }
 0x206   : > { %v1939_v2 = vmul.f32 %v3966_v13, %v1743_v60  ;;  %v1987_v5 = vmul.f32 %v3966_v13, %v1791_v61 }
 0x207   : > { %v2230_v3 = vadd.f32 %v3959_v39, %v2034_v0  ;;  %v2278_v4 = vadd.f32 %v3959_v39, %v2082_v1 }
 0x208   : > { %v1572_v6 = vpop.f32.mrf.mxu2  ;;  %v1692_v7 = vpop.f32.mrf.mxu3  ;;  %v2135_v15 = vadd.f32 %v3959_v39, %v1939_v2  ;;  %v2183_v19 = vadd.f32 %v3959_v39, %v1987_v5 }
 0x209   : > { %v2374_v10 = vmax.f32 %v2230_v3, %v2278_v4  ;;  %v1573_v11 = vadd.f32 %v3977_v9, %v1572_v6  ;;  %v1693_v48 = vadd.f32 %v3977_v9, %v1692_v7  ;;  %v1334_v12 = vpop.f32.mrf.mxu0  ;;  %v1454_v14 = vpop.f32.mrf.mxu1 }
 0x20a   : > { %v1335_v16 = vadd.f32 %v3977_v9, %v1334_v12  ;;  %v1455_v17 = vadd.f32 %v3977_v9, %v1454_v14  ;;  %v2327_v26 = vmax.f32 %v2135_v15, %v2183_v19 }
 0x20b   : > { %v2422_v18 = vmax.f32 %v2326_v8, %v2374_v10  ;;  %v1839_v20 = vmax.f32 %v1573_v11, 0.0  ;;  %v1887_v21 = vmax.f32 %v1693_v48, 0.0 }
 0x20c   : > { %v1744_v22 = vmax.f32 %v1335_v16, 0.0  ;;  %v1792_v25 = vmax.f32 %v1455_v17, 0.0 }
 0x20d   : > { %2471 = vst.msk [vmem:[%s3315_s14 + $0x168] sm:$0xff] %vm2425_vm3, %v2422_v18  ;;  %v2035_v23 = vmul.f32 %v3966_v13, %v1839_v20  ;;  %v2083_v24 = vmul.f32 %v3966_v13, %v1887_v21 }
 0x20e   : > { %v1940_v29 = vmul.f32 %v3966_v13, %v1744_v22  ;;  %v1988_v33 = vmul.f32 %v3966_v13, %v1792_v25 }
 0x20f   : > { %v2231_v27 = vadd.f32 %v3959_v39, %v2035_v23  ;;  %v2279_v28 = vadd.f32 %v3959_v39, %v2083_v24 }
 0x210   : > { %v1574_v30 = vpop.f32.mrf.mxu2  ;;  %v1694_v31 = vpop.f32.mrf.mxu3  ;;  %v2136_v40 = vadd.f32 %v3959_v39, %v1940_v29  ;;  %v2184_v41 = vadd.f32 %v3959_v39, %v1988_v33 }
 0x211   : > { %v2375_v32 = vmax.f32 %v2231_v27, %v2279_v28  ;;  %v1575_v34 = vadd.f32 %v3977_v9, %v1574_v30  ;;  %v1695_v35 = vadd.f32 %v3977_v9, %v1694_v31 }
 0x212   : > { %v2328_v46 = vmax.f32 %v2136_v40, %v2184_v41 }
 0x213   : > { %v2423_v36 = vmax.f32 %v2327_v26, %v2375_v32  ;;  %v1840_v37 = vmax.f32 %v1575_v34, 0.0  ;;  %v1888_v38 = vmax.f32 %v1695_v35, 0.0 }
 0x215   : > { %2472 = vst.msk [vmem:[%s3315_s14 + $0x170] sm:$0xff] %vm2425_vm3, %v2423_v36  ;;  %v2036_v42 = vmul.f32 %v3966_v13, %v1840_v37  ;;  %v2084_v43 = vmul.f32 %v3966_v13, %v1888_v38 }
 0x217   : > { %v2232_v44 = vadd.f32 %v3959_v39, %v2036_v42  ;;  %v2280_v45 = vadd.f32 %v3959_v39, %v2084_v43 }
 0x219   : > { %v2376_v47 = vmax.f32 %v2232_v44, %v2280_v45 }
 0x21b   : > { %v2424_v9 = vmax.f32 %v2328_v46, %v2376_v47 }
 0x21d   : > { %2473 = vst.msk [vmem:[%s3315_s14 + $0x178] sm:$0xff] %vm2425_vm3, %v2424_v9 }
 0x21e PF: > { %s15_s18 = sadd.s32 1, %s3147_s18  }
 0x21f   : > { %p12_p5 = scmp.ge.s32.totalorder %s15_s18, 4  }
 0x221   :  { %14 = sbr.rel (!%p12_p5) target bundleno = 1 (0x1), region = 70 }

</bundles_post_ra>
